<compile_context>
chip_gen: v7x
topology: tpu7x:2x2x1
jax: 0.10.0
libtpu: 0.0.40
codegen_flags: <defaults>
</compile_context>

<pallas_src>
import functools

import jax
import jax.numpy as jnp
from jax import lax
from jax.experimental import pallas as pl
from jax.experimental.pallas import tpu as pltpu

LANE = 128


def _round_up(v, m):
    return ((v + m - 1) // m) * m


# --------------------------------------------------------------------------- fused (small N)
def fused_sage_kernel(a_ref, invdeg_ref, x_ref,
                      w1l_ref, w1r_ref, b1_ref,
                      w2l_ref, w2r_ref, b2_ref,
                      out_ref, *, n_valid):
    # a_ref:      (Np, Np)  bf16  UNNORMALIZED 0/1 adjacency (row i = in-neighbors of i)
    # invdeg_ref: (Np, 1)   f32   exact 1/deg (0 for isolated / padded rows)
    # x_ref:      (Np, F)   bf16  node features
    # w*_ref:     bf16 weights, lane-padded outputs; b*_ref: f32 bias rows
    a = a_ref[...]
    inv_deg = invdeg_ref[...]
    x = x_ref[...]

    # ---- layer 1: mean aggregation (f32 accumulate, exact f32 1/deg) + two summed dots
    agg1 = jnp.dot(a, x, preferred_element_type=jnp.float32) * inv_deg
    h = (jnp.dot(agg1.astype(jnp.bfloat16), w1l_ref[...],
                 preferred_element_type=jnp.float32)
         + jnp.dot(x, w1r_ref[...], preferred_element_type=jnp.float32)
         + b1_ref[...])
    h = jnp.maximum(h, 0.0)
    if n_valid < h.shape[0]:
        # Keep padded node rows exactly zero (they feed layer-2 aggregation as source).
        row_ids = lax.broadcasted_iota(jnp.int32, (h.shape[0], 1), 0)
        h = jnp.where(row_ids < n_valid, h, 0.0)
    h_bf = h.astype(jnp.bfloat16)

    # ---- layer 2
    agg2 = jnp.dot(a, h_bf, preferred_element_type=jnp.float32) * inv_deg
    out = (jnp.dot(agg2.astype(jnp.bfloat16), w2l_ref[...],
                   preferred_element_type=jnp.float32)
           + jnp.dot(h_bf, w2r_ref[...], preferred_element_type=jnp.float32)
           + b2_ref[...])
    out_ref[...] = out.astype(out_ref.dtype)


def _fused_forward(a, inv_deg, x_pad, w1l, w1r, b1, w2l, w2r, b2, *, n_valid):
    n_pad, f_in = x_pad.shape
    h_pad = w1l.shape[1]
    c_pad = w2l.shape[1]

    def full(shape):
        return pl.BlockSpec(shape, lambda i: (0,) * len(shape))

    kernel = functools.partial(fused_sage_kernel, n_valid=n_valid)
    return pl.pallas_call(
        kernel,
        out_shape=jax.ShapeDtypeStruct((n_pad, c_pad), jnp.float32),
        grid=(1,),
        in_specs=[
            full((n_pad, n_pad)),   # A (bf16, unnormalized)
            full((n_pad, 1)),       # 1/deg (f32)
            full((n_pad, f_in)),    # X (bf16)
            full((f_in, h_pad)),    # W1_l
            full((f_in, h_pad)),    # W1_r
            full((1, h_pad)),       # b1
            full((h_pad, c_pad)),   # W2_l
            full((h_pad, c_pad)),   # W2_r
            full((1, c_pad)),       # b2
        ],
        out_specs=full((n_pad, c_pad)),
        compiler_params=pltpu.CompilerParams(
            dimension_semantics=("arbitrary",),
            vmem_limit_bytes=32 << 20,   # tiny at demo scale; safe on every generation
        ),
    )(a, inv_deg, x_pad, w1l, w1r, b1, w2l, w2r, b2)


# --------------------------------------------------------------------------- tiled (large N)
def sage_layer_kernel(a_ref, invdeg_ref, xfull_ref, wl_ref, wr_ref, b_ref, out_ref,
                      *, tm, n_pad, n_valid, apply_relu):
    # a_ref:    (TM, Np)  bf16  unnormalized adjacency rows for this tile
    # invdeg:   (TM, 1)   f32   exact 1/deg for this tile's rows
    # xfull:    (Np, F)   bf16  full node-feature matrix (resident across grid steps)
    # wl/wr:    (F, Fo)   bf16  lin_l / lin_r weights (lane-padded outputs)
    # b_ref:    (1, Fo)   f32
    row0 = pl.multiple_of(pl.program_id(0) * tm, tm)
    xrow = xfull_ref[pl.ds(row0, tm), :]          # this tile's own rows (root term)

    agg = jnp.dot(a_ref[...], xfull_ref[...],
                  preferred_element_type=jnp.float32) * invdeg_ref[...]
    y = (jnp.dot(agg.astype(jnp.bfloat16), wl_ref[...],
                 preferred_element_type=jnp.float32)
         + jnp.dot(xrow, wr_ref[...], preferred_element_type=jnp.float32)
         + b_ref[...])
    if apply_relu:
        y = jnp.maximum(y, 0.0)
    if n_valid < n_pad:
        row_ids = row0 + lax.broadcasted_iota(jnp.int32, (tm, 1), 0)
        y = jnp.where(row_ids < n_valid, y, 0.0)   # padded node rows stay exactly zero
    out_ref[...] = y.astype(out_ref.dtype)


def _sage_layer(a, inv_deg, x, wl, wr, b, *, out_dtype, apply_relu, tm, n_valid,
                vmem_limit_bytes):
    n_pad, f = x.shape
    f_out = wl.shape[1]
    kernel = functools.partial(sage_layer_kernel, tm=tm, n_pad=n_pad, n_valid=n_valid,
                               apply_relu=apply_relu)
    return pl.pallas_call(
        kernel,
        out_shape=jax.ShapeDtypeStruct((n_pad, f_out), out_dtype),
        grid=(n_pad // tm,),
        in_specs=[
            pl.BlockSpec((tm, n_pad), lambda i: (i, 0)),   # adjacency rows for this tile
            pl.BlockSpec((tm, 1), lambda i: (i, 0)),       # 1/deg for this tile
            pl.BlockSpec((n_pad, f), lambda i: (0, 0)),    # full X, resident across steps
            pl.BlockSpec((f, f_out), lambda i: (0, 0)),    # W_l
            pl.BlockSpec((f, f_out), lambda i: (0, 0)),    # W_r
            pl.BlockSpec((1, f_out), lambda i: (0, 0)),    # bias
        ],
        out_specs=pl.BlockSpec((tm, f_out), lambda i: (i, 0)),
        compiler_params=pltpu.CompilerParams(
            # TODO(synk): on v7x verify the row tiles shard across both TensorCores;
            # if not, switch this axis to pltpu.CORE_PARALLEL.
            dimension_semantics=("parallel",),
            vmem_limit_bytes=vmem_limit_bytes,
        ),
    )(a, inv_deg, x, wl, wr, b)


# --------------------------------------------------------------------------- graph prep
def prepare_graph(edge_index, n, *, tm=128):
    """Build once per graph (NOT per forward): padded UNNORMALIZED bf16 adjacency
    (built directly in bf16, no f32 O(N^2) intermediate) + exact f32 inverse in-degrees.
    """
    n_pad = _round_up(n, max(tm, LANE))
    src, dst = edge_index[0], edge_index[1]
    a = jnp.zeros((n_pad, n_pad), jnp.bfloat16).at[dst, src].add(1.0)
    deg = jnp.zeros((n_pad,), jnp.float32).at[dst].add(1.0)
    inv_deg = jnp.where(deg > 0, 1.0 / deg, 0.0).reshape(n_pad, 1)
    return a, inv_deg


# --------------------------------------------------------------------------- wrapper
def graphsage_forward(x, a, inv_deg, params, *, tm=128, fuse_threshold=2048,
                      vmem_limit_bytes=64 << 20, force_tiled=False):
    """x: (N, F_in) f32 node features; a/inv_deg: from prepare_graph.

    Small graphs (N_pad <= fuse_threshold): one fused pallas_call, everything in VMEM.
    Large graphs: row-tiled per-layer kernels.  TM guidance: <=512 on v7x (64 MiB VMEM,
    budget ~48-56 MiB); 512 on v6e/v5e with vmem_limit_bytes ~64-80 MiB (v5e's 16 MiB
    default must be raised).
    """
    n, f_in = x.shape
    n_pad = a.shape[0]
    hidden = params["w1l"].shape[1]
    n_classes = params["w2l"].shape[1]
    h_pad = _round_up(hidden, LANE)
    c_pad = _round_up(n_classes, LANE)

    x_pad = jnp.zeros((n_pad, f_in), jnp.bfloat16).at[:n].set(x.astype(jnp.bfloat16))

    # Lane-padded weights (separate lin_l / lin_r; no in-kernel concatenate any more).
    w1l = jnp.zeros((f_in, h_pad), jnp.bfloat16).at[:, :hidden].set(
        params["w1l"].astype(jnp.bfloat16))
    w1r = jnp.zeros((f_in, h_pad), jnp.bfloat16).at[:, :hidden].set(
        params["w1r"].astype(jnp.bfloat16))
    b1 = jnp.zeros((1, h_pad), jnp.float32).at[:, :hidden].set(params["b1"])
    w2l = jnp.zeros((h_pad, c_pad), jnp.bfloat16).at[:hidden, :n_classes].set(
        params["w2l"].astype(jnp.bfloat16))
    w2r = jnp.zeros((h_pad, c_pad), jnp.bfloat16).at[:hidden, :n_classes].set(
        params["w2r"].astype(jnp.bfloat16))
    b2 = jnp.zeros((1, c_pad), jnp.float32).at[:, :n_classes].set(params["b2"])

    if (n_pad <= fuse_threshold) and not force_tiled:
        out = _fused_forward(a, inv_deg, x_pad, w1l, w1r, b1, w2l, w2r, b2, n_valid=n)
    else:
        h = _sage_layer(a, inv_deg, x_pad, w1l, w1r, b1,
                        out_dtype=jnp.bfloat16, apply_relu=True,
                        tm=tm, n_valid=n, vmem_limit_bytes=vmem_limit_bytes)
        out = _sage_layer(a, inv_deg, h, w2l, w2r, b2,
                          out_dtype=jnp.float32, apply_relu=False,
                          tm=tm, n_valid=n, vmem_limit_bytes=vmem_limit_bytes)
    return out[:n, :n_classes]


# --------------------------------------------------------------------------- init / ref
def init_params(key, f_in, hidden, n_classes):
    """Deterministic synthetic init. Weights stored as (in, out) so the kernel does x @ W."""
    ks = jax.random.split(key, 6)

    def glorot(k, shape):
        fan_in, fan_out = shape
        lim = jnp.sqrt(6.0 / (fan_in + fan_out))
        return jax.random.uniform(k, shape, jnp.float32, -lim, lim)

    return {
        "w1l": glorot(ks[0], (f_in, hidden)),
        "w1r": glorot(ks[1], (f_in, hidden)),
        "b1":  jax.random.uniform(ks[2], (1, hidden), jnp.float32, -0.1, 0.1),
        "w2l": glorot(ks[3], (hidden, n_classes)),
        "w2r": glorot(ks[4], (hidden, n_classes)),
        "b2":  jax.random.uniform(ks[5], (1, n_classes), jnp.float32, -0.1, 0.1),
    }


def reference_forward(x, edge_index, params):
    """Pure-JAX reference mirroring the kernel's bf16 operand quantization
    (f32 accumulation, exact f32 1/deg scaling)."""
    q = lambda t: t.astype(jnp.bfloat16).astype(jnp.float32)
    n = x.shape[0]
    src, dst = edge_index[0], edge_index[1]
    adj = jnp.zeros((n, n), jnp.float32).at[dst, src].add(1.0)
    deg = jnp.sum(adj, axis=1, keepdims=True)
    inv = jnp.where(deg > 0, 1.0 / deg, 0.0)
    a = q(adj)          # 0/1 entries: exact in bf16
    xq = q(x)

    agg1 = (a @ xq) * inv
    h = jnp.maximum(q(agg1) @ q(params["w1l"]) + xq @ q(params["w1r"]) + params["b1"], 0.0)
    hq = q(h)

    agg2 = (a @ hq) * inv
    return q(agg2) @ q(params["w2l"]) + hq @ q(params["w2r"]) + params["b2"]


# --------------------------------------------------------------------------- main
if __name__ == "__main__":
    # Small synthetic stand-in for Amazon('computers'):
    #   N=250 nodes (deliberately not a multiple of 128 to exercise the padding/masking
    #   path), F_in=32 features, hidden=16 (as in the module), C=8 classes, E=1024 edges.
    N, F_IN, HIDDEN, C, E = 250, 32, 16, 8, 1024

    key = jax.random.PRNGKey(0)
    k_x, k_src, k_dst, k_p = jax.random.split(key, 4)

    x = jax.random.normal(k_x, (N, F_IN), jnp.float32)
    edge_index = jnp.stack([
        jax.random.randint(k_src, (E,), 0, N, jnp.int32),
        jax.random.randint(k_dst, (E,), 0, N, jnp.int32),
    ], axis=0)
    params = init_params(k_p, F_IN, HIDDEN, C)

    # Build the (unnormalized) adjacency + exact inverse degrees ONCE per graph.
    a, inv_deg = prepare_graph(edge_index, N, tm=128)

    ref = reference_forward(x, edge_index, params)

    # Default small-N path: single fused pallas_call (both layers in VMEM).
    out_fused = jax.block_until_ready(graphsage_forward(x, a, inv_deg, params))
    assert out_fused.shape == (N, C)
    assert jnp.allclose(out_fused, ref, atol=1e-2, rtol=1e-2), (
        f"fused max abs err = {jnp.max(jnp.abs(out_fused - ref))}")

    # Also validate the row-tiled large-N path at small scale.
    out_tiled = jax.block_until_ready(
        graphsage_forward(x, a, inv_deg, params, force_tiled=True, tm=128))
    assert out_tiled.shape == (N, C)
    assert jnp.allclose(out_tiled, ref, atol=1e-2, rtol=1e-2), (
        f"tiled max abs err = {jnp.max(jnp.abs(out_tiled - ref))}")

    print("KERNEL_OK")
</pallas_src>

<mosaic_0001>
module attributes {stable_mosaic.version = 11 : i64} {
  func.func @fused_sage_kernel(%arg0: i32, %arg1: memref<256x256xbf16, #tpu.memory_space<vmem>>, %arg2: memref<256x1xf32, #tpu.memory_space<vmem>>, %arg3: memref<256x32xbf16, #tpu.memory_space<vmem>>, %arg4: memref<32x128xbf16, #tpu.memory_space<vmem>>, %arg5: memref<32x128xbf16, #tpu.memory_space<vmem>>, %arg6: memref<1x128xf32, #tpu.memory_space<vmem>>, %arg7: memref<128x128xbf16, #tpu.memory_space<vmem>>, %arg8: memref<128x128xbf16, #tpu.memory_space<vmem>>, %arg9: memref<1x128xf32, #tpu.memory_space<vmem>>, %arg10: memref<256x128xf32, #tpu.memory_space<vmem>>) attributes {dimension_semantics = [#tpu.dimension_semantics<arbitrary>], iteration_bounds = array<i64: 1>, scalar_prefetch = 0 : i64, scratch_operands = 0 : i64, tpu.core_type = #tpu.core_type<tc>, window_params = [{pipeline_mode = #tpu.pipeline_mode<synchronous>, transform_indices = @transform_0, window_bounds = array<i64: 256, 256>}, {pipeline_mode = #tpu.pipeline_mode<synchronous>, transform_indices = @transform_1, window_bounds = array<i64: 256, 1>}, {pipeline_mode = #tpu.pipeline_mode<synchronous>, transform_indices = @transform_2, window_bounds = array<i64: 256, 32>}, {pipeline_mode = #tpu.pipeline_mode<synchronous>, transform_indices = @transform_3, window_bounds = array<i64: 32, 128>}, {pipeline_mode = #tpu.pipeline_mode<synchronous>, transform_indices = @transform_4, window_bounds = array<i64: 32, 128>}, {pipeline_mode = #tpu.pipeline_mode<synchronous>, transform_indices = @transform_5, window_bounds = array<i64: 1, 128>}, {pipeline_mode = #tpu.pipeline_mode<synchronous>, transform_indices = @transform_6, window_bounds = array<i64: 128, 128>}, {pipeline_mode = #tpu.pipeline_mode<synchronous>, transform_indices = @transform_7, window_bounds = array<i64: 128, 128>}, {pipeline_mode = #tpu.pipeline_mode<synchronous>, transform_indices = @transform_8, window_bounds = array<i64: 1, 128>}, {pipeline_mode = #tpu.pipeline_mode<synchronous>, transform_indices = @transform_9, window_bounds = array<i64: 256, 128>}]} {
    %c0 = arith.constant 0 : index
    %c0_0 = arith.constant 0 : index
    %0 = vector.load %arg1[%c0, %c0_0] : memref<256x256xbf16, #tpu.memory_space<vmem>>, vector<256x256xbf16>
    %c0_1 = arith.constant 0 : index
    %c0_2 = arith.constant 0 : index
    %1 = vector.load %arg2[%c0_1, %c0_2] : memref<256x1xf32, #tpu.memory_space<vmem>>, vector<256x1xf32>
    %c0_3 = arith.constant 0 : index
    %c0_4 = arith.constant 0 : index
    %2 = vector.load %arg3[%c0_3, %c0_4] : memref<256x32xbf16, #tpu.memory_space<vmem>>, vector<256x32xbf16>
    %cst = arith.constant dense<0.000000e+00> : vector<256x32xf32>
    %3 = tpu.matmul %0, %2, %cst {dimension_numbers = #tpu.dot_dimension_numbers<[1], [0], [0], [1], [0, 0, 1, 1], [], []>} : vector<256x256xbf16>, vector<256x32xbf16>, vector<256x32xf32> -> vector<256x32xf32>
    %4 = vector.broadcast %1 : vector<256x1xf32> to vector<256x32xf32>
    %5 = arith.mulf %3, %4 : vector<256x32xf32>
    %6 = arith.truncf %5 : vector<256x32xf32> to vector<256x32xbf16>
    %c0_5 = arith.constant 0 : index
    %c0_6 = arith.constant 0 : index
    %7 = vector.load %arg4[%c0_5, %c0_6] : memref<32x128xbf16, #tpu.memory_space<vmem>>, vector<32x128xbf16>
    %cst_7 = arith.constant dense<0.000000e+00> : vector<256x128xf32>
    %8 = tpu.matmul %6, %7, %cst_7 {dimension_numbers = #tpu.dot_dimension_numbers<[1], [0], [0], [1], [0, 0, 1, 1], [], []>} : vector<256x32xbf16>, vector<32x128xbf16>, vector<256x128xf32> -> vector<256x128xf32>
    %c0_8 = arith.constant 0 : index
    %c0_9 = arith.constant 0 : index
    %9 = vector.load %arg5[%c0_8, %c0_9] : memref<32x128xbf16, #tpu.memory_space<vmem>>, vector<32x128xbf16>
    %cst_10 = arith.constant dense<0.000000e+00> : vector<256x128xf32>
    %10 = tpu.matmul %2, %9, %cst_10 {dimension_numbers = #tpu.dot_dimension_numbers<[1], [0], [0], [1], [0, 0, 1, 1], [], []>} : vector<256x32xbf16>, vector<32x128xbf16>, vector<256x128xf32> -> vector<256x128xf32>
    %11 = arith.addf %8, %10 : vector<256x128xf32>
    %c0_11 = arith.constant 0 : index
    %c0_12 = arith.constant 0 : index
    %12 = vector.load %arg6[%c0_11, %c0_12] : memref<1x128xf32, #tpu.memory_space<vmem>>, vector<1x128xf32>
    %13 = vector.broadcast %12 : vector<1x128xf32> to vector<256x128xf32>
    %14 = arith.addf %11, %13 : vector<256x128xf32>
    %cst_13 = arith.constant 0.000000e+00 : f32
    %15 = vector.broadcast %cst_13 : f32 to vector<256x128xf32>
    %16 = arith.maximumf %14, %15 : vector<256x128xf32>
    %17 = tpu.iota {dimensions = array<i32: 0>} : vector<256x1xi32>
    %c250_i32 = arith.constant 250 : i32
    %18 = vector.broadcast %c250_i32 : i32 to vector<256x1xi32>
    %19 = arith.cmpi slt, %17, %18 : vector<256x1xi32>
    %cst_14 = arith.constant 0.000000e+00 : f32
    %20 = vector.shape_cast %19 : vector<256x1xi1> to vector<256x1xi1>
    %21 = vector.broadcast %20 : vector<256x1xi1> to vector<256x128xi1>
    %22 = vector.broadcast %cst_14 : f32 to vector<256x128xf32>
    %23 = arith.select %21, %16, %22 : vector<256x128xi1>, vector<256x128xf32>
    %24 = arith.truncf %23 : vector<256x128xf32> to vector<256x128xbf16>
    %cst_15 = arith.constant dense<0.000000e+00> : vector<256x128xf32>
    %25 = tpu.matmul %0, %24, %cst_15 {dimension_numbers = #tpu.dot_dimension_numbers<[1], [0], [0], [1], [0, 0, 1, 1], [], []>} : vector<256x256xbf16>, vector<256x128xbf16>, vector<256x128xf32> -> vector<256x128xf32>
    %26 = vector.broadcast %1 : vector<256x1xf32> to vector<256x128xf32>
    %27 = arith.mulf %25, %26 : vector<256x128xf32>
    %28 = arith.truncf %27 : vector<256x128xf32> to vector<256x128xbf16>
    %c0_16 = arith.constant 0 : index
    %c0_17 = arith.constant 0 : index
    %29 = vector.load %arg7[%c0_16, %c0_17] : memref<128x128xbf16, #tpu.memory_space<vmem>>, vector<128x128xbf16>
    %cst_18 = arith.constant dense<0.000000e+00> : vector<256x128xf32>
    %30 = tpu.matmul %28, %29, %cst_18 {dimension_numbers = #tpu.dot_dimension_numbers<[1], [0], [0], [1], [0, 0, 1, 1], [], []>} : vector<256x128xbf16>, vector<128x128xbf16>, vector<256x128xf32> -> vector<256x128xf32>
    %c0_19 = arith.constant 0 : index
    %c0_20 = arith.constant 0 : index
    %31 = vector.load %arg8[%c0_19, %c0_20] : memref<128x128xbf16, #tpu.memory_space<vmem>>, vector<128x128xbf16>
    %cst_21 = arith.constant dense<0.000000e+00> : vector<256x128xf32>
    %32 = tpu.matmul %24, %31, %cst_21 {dimension_numbers = #tpu.dot_dimension_numbers<[1], [0], [0], [1], [0, 0, 1, 1], [], []>} : vector<256x128xbf16>, vector<128x128xbf16>, vector<256x128xf32> -> vector<256x128xf32>
    %33 = arith.addf %30, %32 : vector<256x128xf32>
    %c0_22 = arith.constant 0 : index
    %c0_23 = arith.constant 0 : index
    %34 = vector.load %arg9[%c0_22, %c0_23] : memref<1x128xf32, #tpu.memory_space<vmem>>, vector<1x128xf32>
    %35 = vector.broadcast %34 : vector<1x128xf32> to vector<256x128xf32>
    %36 = arith.addf %33, %35 : vector<256x128xf32>
    %c0_24 = arith.constant 0 : index
    %c0_25 = arith.constant 0 : index
    %37 = vector.load %arg10[%c0_24, %c0_25] : memref<256x128xf32, #tpu.memory_space<vmem>>, vector<256x128xf32>
    tpu.vector_store %arg10[%c0_24, %c0_25], %36 {strides = array<i32>} : memref<256x128xf32, #tpu.memory_space<vmem>>, vector<256x128xf32>,
    return
  }
  func.func @transform_0(%arg0: i32) -> (i32, i32) {
    %c0_i32 = arith.constant 0 : i32
    %c0_i32_0 = arith.constant 0 : i32
    %c0_i32_1 = arith.constant 0 : i32
    return %c0_i32, %c0_i32_0 : i32, i32
  }
  func.func @transform_1(%arg0: i32) -> (i32, i32) {
    %c0_i32 = arith.constant 0 : i32
    %c0_i32_0 = arith.constant 0 : i32
    %c0_i32_1 = arith.constant 0 : i32
    return %c0_i32, %c0_i32_0 : i32, i32
  }
  func.func @transform_2(%arg0: i32) -> (i32, i32) {
    %c0_i32 = arith.constant 0 : i32
    %c0_i32_0 = arith.constant 0 : i32
    %c0_i32_1 = arith.constant 0 : i32
    return %c0_i32, %c0_i32_0 : i32, i32
  }
  func.func @transform_3(%arg0: i32) -> (i32, i32) {
    %c0_i32 = arith.constant 0 : i32
    %c0_i32_0 = arith.constant 0 : i32
    %c0_i32_1 = arith.constant 0 : i32
    return %c0_i32, %c0_i32_0 : i32, i32
  }
  func.func @transform_4(%arg0: i32) -> (i32, i32) {
    %c0_i32 = arith.constant 0 : i32
    %c0_i32_0 = arith.constant 0 : i32
    %c0_i32_1 = arith.constant 0 : i32
    return %c0_i32, %c0_i32_0 : i32, i32
  }
  func.func @transform_5(%arg0: i32) -> (i32, i32) {
    %c0_i32 = arith.constant 0 : i32
    %c0_i32_0 = arith.constant 0 : i32
    %c0_i32_1 = arith.constant 0 : i32
    return %c0_i32, %c0_i32_0 : i32, i32
  }
  func.func @transform_6(%arg0: i32) -> (i32, i32) {
    %c0_i32 = arith.constant 0 : i32
    %c0_i32_0 = arith.constant 0 : i32
    %c0_i32_1 = arith.constant 0 : i32
    return %c0_i32, %c0_i32_0 : i32, i32
  }
  func.func @transform_7(%arg0: i32) -> (i32, i32) {
    %c0_i32 = arith.constant 0 : i32
    %c0_i32_0 = arith.constant 0 : i32
    %c0_i32_1 = arith.constant 0 : i32
    return %c0_i32, %c0_i32_0 : i32, i32
  }
  func.func @transform_8(%arg0: i32) -> (i32, i32) {
    %c0_i32 = arith.constant 0 : i32
    %c0_i32_0 = arith.constant 0 : i32
    %c0_i32_1 = arith.constant 0 : i32
    return %c0_i32, %c0_i32_0 : i32, i32
  }
  func.func @transform_9(%arg0: i32) -> (i32, i32) {
    %c0_i32 = arith.constant 0 : i32
    %c0_i32_0 = arith.constant 0 : i32
    %c0_i32_1 = arith.constant 0 : i32
    return %c0_i32, %c0_i32_0 : i32, i32
  }
}

</mosaic_0001>

<bundles_post_ra>
// kernel: tpu_custom_call.1
= control target key start
LH: loop header
LB: loop body
LE: loop exit
PB: predicated region body
PF: predicated region fallthrough
CT: control target
= control target key end

     0   :  { %v2987_v2 = vmov 0   ;;  %vm775_vm0 = vcmask 261120   ;;  %s3876_s0 = inlined_call_operand.vmem [shape: bf16[256,256], index: 0, kind: input, shape index: {}]   ;;  %s3877_s1 = inlined_call_operand.vmem [shape: f32[256,1], index: 1, kind: input, shape index: {}]   ;;  %s3878_s2 = inlined_call_operand.vmem [shape: bf16[256,32], index: 2, kind: input, shape index: {}]   ;;  %s3879_s3 = inlined_call_operand.vmem [shape: bf16[32,128], index: 3, kind: input, shape index: {}]   ;;  %s3880_s4 = inlined_call_operand.vmem [shape: bf16[32,128], index: 4, kind: input, shape index: {}]   ;;  %s3881_s5 = inlined_call_operand.vmem [shape: f32[1,128], index: 5, kind: input, shape index: {}]   ;;  %s3882_s6 = inlined_call_operand.vmem [shape: bf16[128,128], index: 6, kind: input, shape index: {}]   ;;  %s3883_s7 = inlined_call_operand.vmem [shape: bf16[128,128], index: 7, kind: input, shape index: {}]   ;;  %s3884_s8 = inlined_call_operand.vmem [shape: f32[1,128], index: 8, kind: input, shape index: {}]   ;;  %s3885_s9 = inlined_call_operand.hbm [shape: f32[256,128], index: 9, kind: output, shape index: {}]  }
   0x1   :  { %v3045_v0 = vld [vmem:[%s3878_s2 + $0x40] sm:$0xff]   ;;  %2869 = vset.pattern.permute.xlu0 %v2987_v2  ;;  %2870 = vset.pattern.permute.xlu1 %v2987_v2  ;;  %v3054_v3 = vld [vmem:[%s3878_s2 + $0x48] sm:$0xff]   ;;  %v3065_v5 = vld [vmem:[%s3878_s2 + $0x50] sm:$0xff]  }
   0x2   :  { %v2872_v1 = vld [vmem:[%s3878_s2] sm:$0xff]   ;;  %2308 = vmatprep.subr.bf16.mxu0 %v3045_v0  ;;  %v3059_v4 = vld [vmem:[%s3878_s2 + $0x8] sm:$0xff]   ;;  %v3071_v6 = vld [vmem:[%s3878_s2 + $0x10] sm:$0xff]  }
   0x3   :  { %2309 = vmatpush3.bf16.msra.mxu0 %v2872_v1  ;;  %v3077_v7 = vld [vmem:[%s3878_s2 + $0x58] sm:$0xff]   ;;  %v3089_v9 = vld [vmem:[%s3878_s2 + $0x60] sm:$0xff]   ;;  %v3101_v11 = vld [vmem:[%s3878_s2 + $0x68] sm:$0xff]   ;;  %2620 = vmatprep.mubr.msk.bf16.mxu1 %vm775_vm0, %v2872_v1 }
   0x4   :  { %2310 = vmatprep.subr.bf16.mxu0 %v3054_v3  ;;  %v3083_v8 = vld [vmem:[%s3878_s2 + $0x18] sm:$0xff]   ;;  %v3095_v10 = vld [vmem:[%s3878_s2 + $0x20] sm:$0xff]   ;;  %v3112_v13 = vld [vmem:[%s3878_s2 + $0x28] sm:$0xff]  }
   0x5   :  { %v3106_v12 = vld [vmem:[%s3876_s0 + $0x4] ss:$8 sps:$4 sm:$0xff]   ;;  %v3119_v14 = vld [vmem:[%s3878_s2 + $0x70] sm:$0xff]   ;;  %v3131_v16 = vld [vmem:[%s3878_s2 + $0x78] sm:$0xff]  }
   0x6   :  { %418 = vmatprep.mubr.bf16.mxu0 %v3106_v12  ;;  %v3125_v15 = vld [vmem:[%s3878_s2 + $0x30] sm:$0xff]   ;;  %v3137_v17 = vld [vmem:[%s3878_s2 + $0x38] sm:$0xff]   ;;  %v66_v18 = vld [vmem:[%s3877_s1] sm:$0xff] }
   0x7   :  { %2311 = vmatpush3.bf16.msra.mxu0 %v3059_v4  ;;  %549 = vperm.xlu0 %2869, %v66_v18   ;;  %v68_v19 = vld [vmem:[%s3877_s1 + $0x10] sm:$0xff]  ;;  %v67_v20 = vld [vmem:[%s3877_s1 + $0x8] sm:$0xff]  ;;  %v69_v22 = vld [vmem:[%s3877_s1 + $0x18] sm:$0xff] }
   0x8   :  { %2312 = vmatprep.subr.bf16.mxu0 %v3065_v5  ;;  %559 = vperm.xlu1 %2870, %v68_v19   ;;  %v2887_v21 = vld [vmem:[%s3876_s0] ss:$8 sps:$4 sm:$0xff]   ;;  %v2890_v23 = vld [vmem:[%s3876_s0 + $0x14] ss:$8 sps:$4 sm:$0xff]   ;;  %v2892_v27 = vld [vmem:[%s3876_s0 + $0x10] ss:$8 sps:$4 sm:$0xff]  }
   0x9   :  { %v70_v24 = vld [vmem:[%s3877_s1 + $0x20] sm:$0xff]  ;;  %v71_v25 = vld [vmem:[%s3877_s1 + $0x28] sm:$0xff]  ;;  %v72_v26 = vld [vmem:[%s3877_s1 + $0x30] sm:$0xff] }
   0xa   :  { %v73_v28 = vld [vmem:[%s3877_s1 + $0x38] sm:$0xff]  ;;  %v2893_v29 = vld [vmem:[%s3876_s0 + $0x24] ss:$8 sps:$4 sm:$0xff]   ;;  %v76_v32 = vld [vmem:[%s3877_s1 + $0x50] sm:$0xff] }
   0xb   :  { %2313 = vmatpush3.bf16.msra.mxu0 %v3071_v6  ;;  %554 = vperm.xlu0 %2869, %v67_v20   ;;  %v74_v30 = vld [vmem:[%s3877_s1 + $0x40] sm:$0xff]  ;;  %v75_v31 = vld [vmem:[%s3877_s1 + $0x48] sm:$0xff]  ;;  %v77_v34 = vld [vmem:[%s3877_s1 + $0x58] sm:$0xff] }
   0xc   :  { %2314 = vmatprep.subr.bf16.mxu0 %v3077_v7  ;;  %564 = vperm.xlu1 %2870, %v69_v22   ;;  %v2895_v33 = vld [vmem:[%s3876_s0 + $0x20] ss:$8 sps:$4 sm:$0xff]   ;;  %v2896_v35 = vld [vmem:[%s3876_s0 + $0x34] ss:$8 sps:$4 sm:$0xff]   ;;  %v2898_v41 = vld [vmem:[%s3876_s0 + $0x30] ss:$8 sps:$4 sm:$0xff]  }
   0xd   :  { %v78_v36 = vld [vmem:[%s3877_s1 + $0x60] sm:$0xff]  ;;  %v79_v37 = vld [vmem:[%s3877_s1 + $0x68] sm:$0xff]  ;;  %v80_v40 = vld [vmem:[%s3877_s1 + $0x70] sm:$0xff] }
   0xe   :  { %v2935_v38 = vld [vmem:[%s3880_s4] sm:$0xff]   ;;  %v2936_v39 = vld [vmem:[%s3880_s4 + $0x8] sm:$0xff]   ;;  %v81_v42 = vld [vmem:[%s3877_s1 + $0x78] sm:$0xff] }
   0xf   :  { %2315 = vmatpush3.bf16.msra.mxu0 %v3083_v8  ;;  %569 = vperm.xlu0 %2869, %v70_v24   ;;  %v2899_v43 = vld [vmem:[%s3876_s0 + $0x44] ss:$8 sps:$4 sm:$0xff]   ;;  %v84_v46 = vld [vmem:[%s3877_s1 + $0x90] sm:$0xff]  ;;  %v3236_v47 = vld [vmem:[%s3876_s0 + $0x40] ss:$8 sps:$4 sm:$0xff]  }
  0x10   :  { %2316 = vmatprep.subr.bf16.mxu0 %v3089_v9  ;;  %574 = vperm.xlu1 %2870, %v71_v25   ;;  %v82_v44 = vld [vmem:[%s3877_s1 + $0x80] sm:$0xff]  ;;  %v83_v45 = vld [vmem:[%s3877_s1 + $0x88] sm:$0xff]  ;;  %v85_v48 = vld [vmem:[%s3877_s1 + $0x98] sm:$0xff] }
  0x11   :  { %2616 = vmatprep.subr.bf16.mxu1 %v2935_v38 }
  0x12   :  { %2617 = vmatpush3.bf16.msra.mxu1 %v2935_v38 }
  0x13   :  { %2317 = vmatpush3.bf16.msra.mxu0 %v3095_v10  ;;  %579 = vperm.xlu0 %2869, %v72_v26  }
  0x14   :  { %2318 = vmatprep.subr.bf16.mxu0 %v3101_v11  ;;  %584 = vperm.xlu1 %2870, %v73_v28  }
  0x15   :  { %2618 = vmatprep.subr.bf16.mxu1 %v2936_v39 }
  0x16   :  { %2619 = vmatpush3.bf16.msra.mxu1 %v2936_v39 }
  0x17   :  { %2319 = vmatpush3.bf16.msra.mxu0 %v3112_v13  ;;  %589 = vperm.xlu0 %2869, %v74_v30  }
  0x18   :  { %2320 = vmatprep.subr.bf16.mxu0 %v3119_v14  ;;  %594 = vperm.xlu1 %2870, %v75_v31  }
  0x19   :  { %2621 = vmatmul.mubr.msk.bf16.vlgmr.msra.gmra.mrb[0].mxu1 %vm775_vm0, %v3059_v4 }
  0x1a   :  { %2624 = vmatprep.mubr.msk.bf16.mxu1 %vm775_vm0, %v3071_v6 }
  0x1b   :  { %2321 = vmatpush3.bf16.msra.mxu0 %v3125_v15  ;;  %599 = vperm.xlu0 %2869, %v76_v32  }
  0x1c   :  { %2322 = vmatprep.subr.bf16.mxu0 %v3131_v16  ;;  %604 = vperm.xlu1 %2870, %v77_v34  }
  0x1f   :  { %2323 = vmatpush3.bf16.msra.mxu0 %v3137_v17  ;;  %609 = vperm.xlu0 %2869, %v78_v36  }
  0x20   :  { %614 = vperm.xlu1 %2870, %v79_v37  }
  0x22   :  { %419 = vmatmul.mubr.bf16.vlgmr.msra.gmra.mrb[0].mxu0 %v2887_v21 }
  0x23   :  { %426 = vmatprep.mubr.bf16.mxu0 %v2890_v23  ;;  %619 = vperm.xlu0 %2869, %v80_v40  }
  0x24   :  { %624 = vperm.xlu1 %2870, %v81_v42  }
  0x27   :  { %629 = vperm.xlu0 %2869, %v82_v44  }
  0x28   :  { %634 = vperm.xlu1 %2870, %v83_v45  }
  0x2a   :  { %427 = vmatmul.mubr.bf16.gmra.mrb[4].mxu0 %v2892_v27 }
  0x2b   :  { %434 = vmatprep.mubr.bf16.mxu0 %v2893_v29 }
  0x32   :  { %435 = vmatmul.mubr.bf16.gmra.mrb[8].mxu0 %v2895_v33 }
  0x33   :  { %442 = vmatprep.mubr.bf16.mxu0 %v2896_v35 }
  0x3a   :  { %443 = vmatmul.mubr.bf16.gmra.mrb[12].mxu0 %v2898_v41 }
  0x3b   :  { %450 = vmatprep.mubr.bf16.mxu0 %v2899_v43 }
  0x3c   :  { %14 = vsyncpa [#allocation3], 0  ;;  %v3244_v49 = vld [vmem:[%s3876_s0 + $0x54] ss:$8 sps:$4 sm:$0xff]   ;;  %639 = vperm.xlu0 %2869, %v84_v46   ;;  %644 = vperm.xlu1 %2870, %v85_v48   ;;  %v86_v50 = vld [vmem:[%s3877_s1 + $0xa0] sm:$0xff]  ;;  %vm2988_vm2 = vmmov 1  }
  0x3d   :  { %v87_v51 = vld [vmem:[%s3877_s1 + $0xa8] sm:$0xff]  ;;  %2625 = vmatmul.mubr.msk.bf16.gmra.mrb[4].mxu1 %vm775_vm0, %v3083_v8  ;;  %v88_v52 = vld [vmem:[%s3877_s1 + $0xb0] sm:$0xff]  ;;  %v89_v54 = vld [vmem:[%s3877_s1 + $0xb8] sm:$0xff] }
  0x3e   :  { %2628 = vmatprep.mubr.msk.bf16.mxu1 %vm775_vm0, %v3095_v10  ;;  %v3264_v53 = vld [vmem:[%s3876_s0 + $0x50] ss:$8 sps:$4 sm:$0xff]   ;;  %v3272_v55 = vld [vmem:[%s3876_s0 + $0x64] ss:$8 sps:$4 sm:$0xff]   ;;  %v3292_v59 = vld [vmem:[%s3876_s0 + $0x60] ss:$8 sps:$4 sm:$0xff]  }
  0x3f   :  { %v90_v56 = vld [vmem:[%s3877_s1 + $0xc0] sm:$0xff]  ;;  %v91_v57 = vld [vmem:[%s3877_s1 + $0xc8] sm:$0xff]  ;;  %v92_v58 = vld [vmem:[%s3877_s1 + $0xd0] sm:$0xff] }
  0x40   :  { %649 = vperm.xlu0 %2869, %v86_v50   ;;  %654 = vperm.xlu1 %2870, %v87_v51   ;;  %v93_v60 = vld [vmem:[%s3877_s1 + $0xd8] sm:$0xff]  ;;  %v94_v62 = vld [vmem:[%s3877_s1 + $0xe0] sm:$0xff]  ;;  %v95_v63 = vld [vmem:[%s3877_s1 + $0xe8] sm:$0xff] }
  0x41   :  { %v3300_v61 = vld [vmem:[%s3876_s0 + $0x74] ss:$8 sps:$4 sm:$0xff]   ;;  %v3320_v2 = vld [vmem:[%s3876_s0 + $0x70] ss:$8 sps:$4 sm:$0xff]   ;;  %v3328_v6 = vld [vmem:[%s3876_s0 + $0x84] ss:$8 sps:$4 sm:$0xff]  }
  0x42   :  { %451 = vmatmul.mubr.bf16.gmra.mrb[16].mxu0 %v3236_v47  ;;  %v96_v1 = vld [vmem:[%s3877_s1 + $0xf0] sm:$0xff]  ;;  %v97_v4 = vld [vmem:[%s3877_s1 + $0xf8] sm:$0xff]  ;;  %v3420_v18 = vld [vmem:[%s3876_s0 + $0xe4] ss:$8 sps:$4 sm:$0xff]  }
  0x43   :  { %458 = vmatprep.mubr.bf16.mxu0 %v3244_v49  ;;  %v3344_v8 = vld [vmem:[%s3876_s0 + $0x94] ss:$8 sps:$4 sm:$0xff]   ;;  %v3385_v10 = vld [vmem:[%s3876_s0 + $0xb0] ss:$8 sps:$4 sm:$0xff]   ;;  %v3427_v19 = vld [vmem:[%s3876_s0 + $0xe0] ss:$8 sps:$4 sm:$0xff]  }
  0x44   :  { %659 = vperm.xlu0 %2869, %v88_v52   ;;  %664 = vperm.xlu1 %2870, %v89_v54   ;;  %v3432_v20 = vld [vmem:[%s3876_s0 + $0xf4] ss:$8 sps:$4 sm:$0xff]   ;;  %v3439_v21 = vld [vmem:[%s3876_s0 + $0xf0] ss:$8 sps:$4 sm:$0xff]   ;;  %v3447_v27 = vld [vmem:[%s3883_s7] sm:$0xff]  }
  0x45   :  { %2629 = vmatmul.mubr.msk.bf16.gmra.mrb[8].mxu1 %vm775_vm0, %v3112_v13  ;;  %v2937_v13 = vld [vmem:[%s3879_s3] sm:$0xff]   ;;  %v3452_v28 = vld [vmem:[%s3883_s7 + $0x8] sm:$0xff]   ;;  %2688 = vmatprep.subr.bf16.mxu0 %v3447_v27  ;;  %v3464_v34 = vld [vmem:[%s3883_s7 + $0x10] sm:$0xff]  }
  0x46   :  { %2632 = vmatprep.mubr.msk.bf16.mxu1 %vm775_vm0, %v3125_v15  ;;  %v3405_v15 = vld [vmem:[%s3876_s0 + $0xd4] ss:$8 sps:$4 sm:$0xff]   ;;  %2652 = vmatprep.subr.bf16.mxu1 %v2937_v13  ;;  %v3485_v48 = vld [vmem:[%s3883_s7 + $0x20] sm:$0xff]  }
  0x47   :  { %2653 = vmatpush3.bf16.msra.mxu1 %v2937_v13  ;;  %2689 = vmatpush3.bf16.msra.mxu0 %v3447_v27  ;;  %v3474_v41 = vld [vmem:[%s3883_s7 + $0x18] sm:$0xff]  }
  0x48   :  { %669 = vperm.xlu0 %2869, %v90_v56   ;;  %674 = vperm.xlu1 %2870, %v91_v57   ;;  %v3493_v57 = vld [vmem:[%s3883_s7 + $0x28] sm:$0xff]  }
  0x49   :  { %2690 = vmatprep.subr.bf16.mxu0 %v3452_v28 }
  0x4a   :  { %459 = vmatmul.mubr.bf16.gmra.mrb[20].mxu0 %v3264_v53 }
  0x4b   :  { %466 = vmatprep.mubr.bf16.mxu0 %v3272_v55  ;;  %2691 = vmatpush3.bf16.msra.mxu0 %v3452_v28 }
  0x4c   :  { %679 = vperm.xlu0 %2869, %v92_v58   ;;  %684 = vperm.xlu1 %2870, %v93_v60  }
  0x4d   :  { %2633 = vmatmul.mubr.msk.bf16.gmra.mrb[12].mxu1 %vm775_vm0, %v3137_v17  ;;  %v3415_v17 = vld [vmem:[%s3876_s0 + $0xd0] ss:$8 sps:$4 sm:$0xff]   ;;  %2692 = vmatprep.subr.bf16.mxu0 %v3464_v34 }
  0x4e   :  { %2636 = vmatprep.mubr.msk.bf16.mxu1 %vm775_vm0, %v3045_v0  ;;  %v3339_v0 = vld [vmem:[%s3876_s0 + $0x80] ss:$8 sps:$4 sm:$0xff]  }
  0x4f   :  { %2693 = vmatpush3.bf16.msra.mxu0 %v3464_v34 }
  0x50   :  { %689 = vperm.xlu0 %2869, %v94_v62   ;;  %694 = vperm.xlu1 %2870, %v95_v63  }
  0x51   :  { %2694 = vmatprep.subr.bf16.mxu0 %v3474_v41 }
  0x52   :  { %467 = vmatmul.mubr.bf16.gmra.mrb[24].mxu0 %v3292_v59 }
  0x53   :  { %474 = vmatprep.mubr.bf16.mxu0 %v3300_v61  ;;  %2695 = vmatpush3.bf16.msra.mxu0 %v3474_v41 }
  0x54   :  { %699 = vperm.xlu0 %2869, %v96_v1   ;;  %704 = vperm.xlu1 %2870, %v97_v4  }
  0x55   :  { %2637 = vmatmul.mubr.msk.bf16.gmra.mrb[16].mxu1 %vm775_vm0, %v3054_v3  ;;  %v3355_v3 = vld [vmem:[%s3876_s0 + $0x90] ss:$8 sps:$4 sm:$0xff]   ;;  %2696 = vmatprep.subr.bf16.mxu0 %v3485_v48 }
  0x56   :  { %2640 = vmatprep.mubr.msk.bf16.mxu1 %vm775_vm0, %v3065_v5  ;;  %v3360_v5 = vld [vmem:[%s3876_s0 + $0xa4] ss:$8 sps:$4 sm:$0xff]  }
  0x57   :  { %2697 = vmatpush3.bf16.msra.mxu0 %v3485_v48 }
  0x58   :  { %2698 = vmatprep.subr.bf16.mxu0 %v3493_v57 }
  0x5a   :  { %475 = vmatmul.mubr.bf16.gmra.mrb[28].mxu0 %v3320_v2 }
  0x5b   :  { %482 = vmatprep.mubr.bf16.mxu0 %v3328_v6  ;;  %2699 = vmatpush3.bf16.msra.mxu0 %v3493_v57 }
  0x5d   :  { %2641 = vmatmul.mubr.msk.bf16.gmra.mrb[20].mxu1 %vm775_vm0, %v3077_v7  ;;  %v3371_v7 = vld [vmem:[%s3876_s0 + $0xa0] ss:$8 sps:$4 sm:$0xff]  }
  0x5e   :  { %2644 = vmatprep.mubr.msk.bf16.mxu1 %vm775_vm0, %v3089_v9  ;;  %v3376_v9 = vld [vmem:[%s3876_s0 + $0xb4] ss:$8 sps:$4 sm:$0xff]  }
  0x62   :  { %483 = vmatmul.mubr.bf16.gmra.mrb[32].mxu0 %v3339_v0 }
  0x63   :  { %490 = vmatprep.mubr.bf16.mxu0 %v3344_v8 }
  0x65   :  { %2645 = vmatmul.mubr.msk.bf16.gmra.mrb[24].mxu1 %vm775_vm0, %v3101_v11  ;;  %v3390_v11 = vld [vmem:[%s3876_s0 + $0xc4] ss:$8 sps:$4 sm:$0xff]  }
  0x66   :  { %2648 = vmatprep.mubr.msk.bf16.mxu1 %vm775_vm0, %v3119_v14  ;;  %v3400_v14 = vld [vmem:[%s3876_s0 + $0xc0] ss:$8 sps:$4 sm:$0xff]  }
  0x6a   :  { %491 = vmatmul.mubr.bf16.gmra.mrb[36].mxu0 %v3355_v3 }
  0x6b   :  { %498 = vmatprep.mubr.bf16.mxu0 %v3360_v5 }
  0x6d   :  { %2649 = vmatmul.mubr.msk.bf16.gmra.mrb[28].mxu1 %vm775_vm0, %v3131_v16  ;;  %v2938_v16 = vld [vmem:[%s3879_s3 + $0x8] sm:$0xff]  }
  0x6e   :  { %2654 = vmatprep.subr.bf16.mxu1 %v2938_v16 }
  0x6f   :  { %2655 = vmatpush3.bf16.msra.mxu1 %v2938_v16 }
  0x72   :  { %499 = vmatmul.mubr.bf16.gmra.mrb[40].mxu0 %v3371_v7 }
  0x73   :  { %506 = vmatprep.mubr.bf16.mxu0 %v3376_v9 }
  0x7a   :  { %507 = vmatmul.mubr.bf16.gmra.mrb[44].mxu0 %v3385_v10 }
  0x7b   :  { %514 = vmatprep.mubr.bf16.mxu0 %v3390_v11 }
  0x82   :  { %515 = vmatmul.mubr.bf16.gmra.mrb[48].mxu0 %v3400_v14 }
  0x83   :  { %522 = vmatprep.mubr.bf16.mxu0 %v3405_v15 }
  0x86   :  { %v3442_v22 = vpop.permute.xlu0 %549 }
  0x87   :  { %v3466_v35 = vpop.permute.xlu1 %559 }
  0x8a   :  { %523 = vmatmul.mubr.bf16.gmra.mrb[52].mxu0 %v3415_v17  ;;  %v3454_v29 = vpop.permute.xlu0 %554 }
  0x8b   :  { %530 = vmatprep.mubr.bf16.mxu0 %v3420_v18  ;;  %v3476_v44 = vpop.permute.xlu1 %564 }
  0x8e   :  { %v3495_v62 = vpop.permute.xlu0 %569 }
  0x8f   :  { %v3497_v63 = vpop.permute.xlu1 %574 }
  0x92   :  { %531 = vmatmul.mubr.bf16.gmra.mrb[56].mxu0 %v3427_v19 }
  0x93   :  { %538 = vmatprep.mubr.bf16.mxu0 %v3432_v20 }
  0x9a   :  { %539 = vmatmul.mubr.bf16.gmra.mrb[60].mxu0 %v3439_v21 }
  0xf5   :  { %v2324_v23 = vpop.f32.mrb[0].mxu0 }
  0xf6   :  { %v2325_v24 = vpop.f32.mrb[1].mxu0 }
  0xf7   :  { %v2326_v25 = vadd.f32 %v2325_v24, %v2324_v23  ;;  %v2327_v26 = vpop.f32.mrb[2].mxu0 }
  0xf8   :  { %v2328_v30 = vpop.f32.mrb[3].mxu0 }
  0xf9   :  { %v2329_v31 = vadd.f32 %v2328_v30, %v2327_v26  ;;  %v707_v32 = vmul.f32 %v2326_v25, %v3442_v22 }
  0xfb   :  { %v708_v33 = vmul.f32 %v2329_v31, %v3454_v29  ;;  %v3505_v31 = vpop.permute.xlu0 %579 }
  0xfd   :  { %v739_v36 = vpack.c.bf16 %v708_v33, %v707_v32  ;;  %v2330_v37 = vpop.f32.mrb[4].mxu0  ;;  %v3507_v32 = vpop.permute.xlu1 %584 }
  0xfe   :  { %v2331_v38 = vpop.f32.mrb[5].mxu0 }
  0xff   :  { %v2332_v39 = vadd.f32 %v2331_v38, %v2330_v37  ;;  %v2333_v40 = vpop.f32.mrb[6].mxu0  ;;  %2656 = vmatprep.mubr.msk.bf16.mxu1 %vm775_vm0, %v739_v36 }
 0x100   :  { %v2334_v42 = vpop.f32.mrb[7].mxu0 }
 0x101   :  { %v2335_v43 = vadd.f32 %v2334_v42, %v2333_v40  ;;  %v709_v45 = vmul.f32 %v2332_v39, %v3466_v35 }
 0x103   :  { %v710_v46 = vmul.f32 %v2335_v43, %v3476_v44 }
 0x105   :  { %v740_v50 = vpack.c.bf16 %v710_v46, %v709_v45  ;;  %v2336_v51 = vpop.f32.mrb[8].mxu0  ;;  %v3512_v46 = vpop.permute.xlu0 %589 }
 0x106   :  { %v2337_v52 = vpop.f32.mrb[9].mxu0 }
 0x107   :  { %v2338_v54 = vadd.f32 %v2337_v52, %v2336_v51  ;;  %v2339_v56 = vpop.f32.mrb[10].mxu0  ;;  %2657 = vmatmul.mubr.msk.bf16.vlgmr.msra.gmra.mrb[0].mxu1 %vm775_vm0, %v740_v50  ;;  %v3514_v50 = vpop.permute.xlu1 %594 }
 0x108   :  { %v2340_v58 = vpop.f32.mrb[11].mxu0 }
 0x109   :  { %v2341_v60 = vadd.f32 %v2340_v58, %v2339_v56  ;;  %v711_v1 = vmul.f32 %v2338_v54, %v3495_v62 }
 0x10b   :  { %v712_v4 = vmul.f32 %v2341_v60, %v3497_v63 }
 0x10d   :  { %v741_v13 = vpack.c.bf16 %v712_v4, %v711_v1  ;;  %v2342_v16 = vpop.f32.mrb[12].mxu0 }
 0x10e   :  { %v2343_v23 = vpop.f32.mrb[13].mxu0 }
 0x10f   :  { %v2344_v24 = vadd.f32 %v2343_v23, %v2342_v16  ;;  %v2345_v25 = vpop.f32.mrb[14].mxu0  ;;  %2660 = vmatprep.mubr.msk.bf16.mxu1 %vm775_vm0, %v741_v13  ;;  %v3519_v16 = vpop.permute.xlu0 %599 }
 0x110   :  { %v2346_v26 = vpop.f32.mrb[15].mxu0  ;;  %3908 = vst [vmem:[#allocation5_spill] sm:$0xff] %v3519_v16  ;;  %v3521_v23 = vpop.permute.xlu1 %604 }
 0x111   :  { %v2347_v30 = vadd.f32 %v2346_v26, %v2345_v25  ;;  %v713_v33 = vmul.f32 %v2344_v24, %v3505_v31  ;;  %3909 = vst [vmem:[#allocation6_spill] sm:$0xff] %v3521_v23 }
 0x113   :  { %v714_v36 = vmul.f32 %v2347_v30, %v3507_v32 }
 0x115   :  { %v742_v37 = vpack.c.bf16 %v714_v36, %v713_v33  ;;  %v2348_v38 = vpop.f32.mrb[16].mxu0 }
 0x116   :  { %v2349_v39 = vpop.f32.mrb[17].mxu0 }
 0x117   :  { %v2350_v40 = vadd.f32 %v2349_v39, %v2348_v38  ;;  %v2351_v42 = vpop.f32.mrb[18].mxu0  ;;  %2661 = vmatmul.mubr.msk.bf16.gmra.mrb[4].mxu1 %vm775_vm0, %v742_v37 }
 0x118   :  { %v2352_v43 = vpop.f32.mrb[19].mxu0 }
 0x119   :  { %v2353_v45 = vadd.f32 %v2352_v43, %v2351_v42  ;;  %v715_v51 = vmul.f32 %v2350_v40, %v3512_v46  ;;  %v3526_v40 = vpop.permute.xlu0 %609  ;;  %v3528_v42 = vpop.permute.xlu1 %614 }
 0x11a   :  { %3910 = vst [vmem:[#allocation7_spill] sm:$0xff] %v3526_v40  ;;  %3911 = vst [vmem:[#allocation8_spill] sm:$0xff] %v3528_v42 }
 0x11b   :  { %v716_v52 = vmul.f32 %v2353_v45, %v3514_v50 }
 0x11d   :  { %v743_v54 = vpack.c.bf16 %v716_v52, %v715_v51  ;;  %v2354_v56 = vpop.f32.mrb[20].mxu0 }
 0x11e   :  { %v2355_v58 = vpop.f32.mrb[21].mxu0 }
 0x11f   :  { %v2356_v60 = vadd.f32 %v2355_v58, %v2354_v56  ;;  %v2357_v1 = vpop.f32.mrb[22].mxu0  ;;  %2664 = vmatprep.mubr.msk.bf16.mxu1 %vm775_vm0, %v743_v54 }
 0x120   :  { %v2358_v4 = vpop.f32.mrb[23].mxu0 }
 0x121   :  { %v2359_v13 = vadd.f32 %v2358_v4, %v2357_v1  ;;  %v717_v24 = vmul.f32 %v2356_v60, %v3519_v16  ;;  %v3533_v4 = vpop.permute.xlu0 %619 }
 0x122   :  { %3912 = vst [vmem:[#allocation9_spill] sm:$0xff] %v3533_v4 }
 0x123   :  { %v718_v25 = vmul.f32 %v2359_v13, %v3521_v23  ;;  %v3535_v13 = vpop.permute.xlu1 %624 }
 0x124   :  { %3913 = vst [vmem:[#allocation10_spill] sm:$0xff] %v3535_v13 }
 0x125   :  { %v744_v26 = vpack.c.bf16 %v718_v25, %v717_v24  ;;  %v2360_v30 = vpop.f32.mrb[24].mxu0 }
 0x126   :  { %v2361_v33 = vpop.f32.mrb[25].mxu0 }
 0x127   :  { %v2362_v36 = vadd.f32 %v2361_v33, %v2360_v30  ;;  %v2363_v37 = vpop.f32.mrb[26].mxu0  ;;  %2665 = vmatmul.mubr.msk.bf16.gmra.mrb[8].mxu1 %vm775_vm0, %v744_v26 }
 0x128   :  { %v2364_v38 = vpop.f32.mrb[27].mxu0 }
 0x129   :  { %v2365_v39 = vadd.f32 %v2364_v38, %v2363_v37  ;;  %v719_v43 = vmul.f32 %v2362_v36, %v3526_v40 }
 0x12b   :  { %v720_v45 = vmul.f32 %v2365_v39, %v3528_v42 }
 0x12d   :  { %v745_v51 = vpack.c.bf16 %v720_v45, %v719_v43  ;;  %v2366_v52 = vpop.f32.mrb[28].mxu0  ;;  %v3540_v43 = vpop.permute.xlu0 %629 }
 0x12e   :  { %v2367_v54 = vpop.f32.mrb[29].mxu0  ;;  %3914 = vst [vmem:[#allocation11_spill] sm:$0xff] %v3540_v43  ;;  %v3542_v45 = vpop.permute.xlu1 %634 }
 0x12f   :  { %v2368_v56 = vadd.f32 %v2367_v54, %v2366_v52  ;;  %v2369_v58 = vpop.f32.mrb[30].mxu0  ;;  %2668 = vmatprep.mubr.msk.bf16.mxu1 %vm775_vm0, %v745_v51  ;;  %3915 = vst [vmem:[#allocation12_spill] sm:$0xff] %v3542_v45 }
 0x130   :  { %v2370_v60 = vpop.f32.mrb[31].mxu0 }
 0x131   :  { %v2371_v1 = vadd.f32 %v2370_v60, %v2369_v58  ;;  %v721_v24 = vmul.f32 %v2368_v56, %v3533_v4 }
 0x133   :  { %v722_v25 = vmul.f32 %v2371_v1, %v3535_v13 }
 0x135   :  { %v746_v26 = vpack.c.bf16 %v722_v25, %v721_v24  ;;  %v2372_v30 = vpop.f32.mrb[32].mxu0 }
 0x136   :  { %v2373_v33 = vpop.f32.mrb[33].mxu0 }
 0x137   :  { %v2374_v36 = vadd.f32 %v2373_v33, %v2372_v30  ;;  %v2375_v37 = vpop.f32.mrb[34].mxu0  ;;  %2669 = vmatmul.mubr.msk.bf16.gmra.mrb[12].mxu1 %vm775_vm0, %v746_v26  ;;  %v3547_v26 = vpop.permute.xlu0 %639 }
 0x138   :  { %v2376_v38 = vpop.f32.mrb[35].mxu0  ;;  %3916 = vst [vmem:[#allocation13_spill] sm:$0xff] %v3547_v26  ;;  %v3549_v30 = vpop.permute.xlu1 %644 }
 0x139   :  { %v2377_v39 = vadd.f32 %v2376_v38, %v2375_v37  ;;  %v723_v51 = vmul.f32 %v2374_v36, %v3540_v43  ;;  %3917 = vst [vmem:[#allocation14_spill] sm:$0xff] %v3549_v30 }
 0x13b   :  { %v724_v52 = vmul.f32 %v2377_v39, %v3542_v45 }
 0x13d   :  { %v747_v54 = vpack.c.bf16 %v724_v52, %v723_v51  ;;  %v2378_v56 = vpop.f32.mrb[36].mxu0 }
 0x13e   :  { %v2379_v58 = vpop.f32.mrb[37].mxu0 }
 0x13f   :  { %v2380_v60 = vadd.f32 %v2379_v58, %v2378_v56  ;;  %v2381_v1 = vpop.f32.mrb[38].mxu0  ;;  %2672 = vmatprep.mubr.msk.bf16.mxu1 %vm775_vm0, %v747_v54  ;;  %v3554_v54 = vpop.permute.xlu0 %649 }
 0x140   :  { %v2382_v24 = vpop.f32.mrb[39].mxu0  ;;  %3918 = vst [vmem:[#allocation15_spill] sm:$0xff] %v3554_v54 }
 0x141   :  { %v2383_v25 = vadd.f32 %v2382_v24, %v2381_v1  ;;  %v725_v33 = vmul.f32 %v2380_v60, %v3547_v26  ;;  %v3556_v1 = vpop.permute.xlu1 %654 }
 0x142   :  { %3919 = vst [vmem:[#allocation16_spill] sm:$0xff] %v3556_v1 }
 0x143   :  { %v726_v37 = vmul.f32 %v2383_v25, %v3549_v30 }
 0x145   :  { %v748_v36 = vpack.c.bf16 %v726_v37, %v725_v33  ;;  %v2384_v38 = vpop.f32.mrb[40].mxu0 }
 0x146   :  { %v2385_v39 = vpop.f32.mrb[41].mxu0 }
 0x147   :  { %v2386_v51 = vadd.f32 %v2385_v39, %v2384_v38  ;;  %v2387_v52 = vpop.f32.mrb[42].mxu0  ;;  %2673 = vmatmul.mubr.msk.bf16.gmra.mrb[16].mxu1 %vm775_vm0, %v748_v36  ;;  %v3561_v36 = vpop.permute.xlu0 %659 }
 0x148   :  { %v2388_v56 = vpop.f32.mrb[43].mxu0  ;;  %3920 = vst [vmem:[#allocation17_spill] sm:$0xff] %v3561_v36 }
 0x149   :  { %v2389_v58 = vadd.f32 %v2388_v56, %v2387_v52  ;;  %v727_v24 = vmul.f32 %v2386_v51, %v3554_v54  ;;  %v3563_v52 = vpop.permute.xlu1 %664 }
 0x14a   :  { %3921 = vst [vmem:[#allocation18_spill] sm:$0xff] %v3563_v52 }
 0x14b   :  { %v728_v45 = vmul.f32 %v2389_v58, %v3556_v1 }
 0x14d   :  { %v749_v60 = vpack.c.bf16 %v728_v45, %v727_v24  ;;  %v2390_v26 = vpop.f32.mrb[44].mxu0 }
 0x14e   :  { %v2391_v25 = vpop.f32.mrb[45].mxu0 }
 0x14f   :  { %v2392_v33 = vadd.f32 %v2391_v25, %v2390_v26  ;;  %v2393_v37 = vpop.f32.mrb[46].mxu0  ;;  %2676 = vmatprep.mubr.msk.bf16.mxu1 %vm775_vm0, %v749_v60  ;;  %v3568_v60 = vpop.permute.xlu0 %669 }
 0x150   :  { %v2394_v38 = vpop.f32.mrb[47].mxu0  ;;  %3922 = vst [vmem:[#allocation19_spill] sm:$0xff] %v3568_v60 }
 0x151   :  { %v2395_v39 = vadd.f32 %v2394_v38, %v2393_v37  ;;  %v729_v56 = vmul.f32 %v2392_v33, %v3561_v36  ;;  %v3570_v37 = vpop.permute.xlu1 %674 }
 0x152   :  { %3923 = vst [vmem:[#allocation20_spill] sm:$0xff] %v3570_v37 }
 0x153   :  { %v730_v30 = vmul.f32 %v2395_v39, %v3563_v52 }
 0x155   :  { %v750_v51 = vpack.c.bf16 %v730_v30, %v729_v56  ;;  %v2396_v54 = vpop.f32.mrb[48].mxu0  ;;  %v3577_v30 = vld [vmem:[%s3883_s7 + $0x30] sm:$0xff]  }
 0x156   :  { %v2397_v58 = vpop.f32.mrb[49].mxu0  ;;  %2700 = vmatprep.subr.bf16.mxu0 %v3577_v30 }
 0x157   :  { %v2398_v45 = vadd.f32 %v2397_v58, %v2396_v54  ;;  %v2399_v24 = vpop.f32.mrb[50].mxu0  ;;  %2677 = vmatmul.mubr.msk.bf16.gmra.mrb[20].mxu1 %vm775_vm0, %v750_v51  ;;  %2701 = vmatpush3.bf16.msra.mxu0 %v3577_v30  ;;  %v3585_v58 = vld [vmem:[%s3883_s7 + $0x38] sm:$0xff]  }
 0x158   :  { %v2400_v26 = vpop.f32.mrb[51].mxu0  ;;  %2702 = vmatprep.subr.bf16.mxu0 %v3585_v58 }
 0x159   :  { %v2401_v25 = vadd.f32 %v2400_v26, %v2399_v24  ;;  %v731_v38 = vmul.f32 %v2398_v45, %v3568_v60  ;;  %v3590_v26 = vpop.permute.xlu1 %684 }
 0x15a   :  { %3925 = vst [vmem:[#allocation22_spill] sm:$0xff] %v3590_v26 }
 0x15b   :  { %v732_v1 = vmul.f32 %v2401_v25, %v3570_v37  ;;  %2703 = vmatpush3.bf16.msra.mxu0 %v3585_v58 }
 0x15d   :  { %v751_v33 = vpack.c.bf16 %v732_v1, %v731_v38  ;;  %v2402_v54 = vpop.f32.mrb[52].mxu0  ;;  %v3588_v1 = vpop.permute.xlu0 %679 }
 0x15e   :  { %v2403_v39 = vpop.f32.mrb[53].mxu0  ;;  %3924 = vst [vmem:[#allocation21_spill] sm:$0xff] %v3588_v1  ;;  %v3598_v36 = vpop.permute.xlu1 %694 }
 0x15f   :  { %v2404_v56 = vadd.f32 %v2403_v39, %v2402_v54  ;;  %v2405_v51 = vpop.f32.mrb[54].mxu0  ;;  %2680 = vmatprep.mubr.msk.bf16.mxu1 %vm775_vm0, %v751_v33  ;;  %3927 = vst [vmem:[#allocation24_spill] sm:$0xff] %v3598_v36 }
 0x160   :  { %v2406_v45 = vpop.f32.mrb[55].mxu0 }
 0x161   :  { %v2407_v24 = vadd.f32 %v2406_v45, %v2405_v51  ;;  %v733_v25 = vmul.f32 %v2404_v56, %v3588_v1  ;;  %v3596_v52 = vpop.permute.xlu0 %689 }
 0x162   :  { %3926 = vst [vmem:[#allocation23_spill] sm:$0xff] %v3596_v52 }
 0x163   :  { %v734_v38 = vmul.f32 %v2407_v24, %v3590_v26 }
 0x165   :  { %v752_v33 = vpack.c.bf16 %v734_v38, %v733_v25  ;;  %v2408_v54 = vpop.f32.mrb[56].mxu0 }
 0x166   :  { %v2409_v39 = vpop.f32.mrb[57].mxu0 }
 0x167   :  { %v2410_v37 = vadd.f32 %v2409_v39, %v2408_v54  ;;  %v2411_v60 = vpop.f32.mrb[58].mxu0  ;;  %2681 = vmatmul.mubr.msk.bf16.gmra.mrb[24].mxu1 %vm775_vm0, %v752_v33  ;;  %v3603_v33 = vpop.permute.xlu0 %699 }
 0x168   :  { %v2412_v51 = vpop.f32.mrb[59].mxu0  ;;  %3928 = vst [vmem:[#allocation25_spill] sm:$0xff] %v3603_v33 }
 0x169   :  { %v2413_v45 = vadd.f32 %v2412_v51, %v2411_v60  ;;  %v735_v43 = vmul.f32 %v2410_v37, %v3596_v52  ;;  %v3605_v60 = vpop.permute.xlu1 %704 }
 0x16a   :  { %3929 = vst [vmem:[#allocation26_spill] sm:$0xff] %v3605_v60 }
 0x16b   :  { %v736_v13 = vmul.f32 %v2413_v45, %v3598_v36 }
 0x16d   :  { %v753_v56 = vpack.c.bf16 %v736_v13, %v735_v43  ;;  %v2414_v1 = vpop.f32.mrb[60].mxu0  ;;  %v3614_v13 = vld [vmem:[%s3881_s5] ss:$0 sm:$0xff] }
 0x16e   :  { %v2415_v24 = vpop.f32.mrb[61].mxu0 }
 0x16f   :  { %v2416_v25 = vadd.f32 %v2415_v24, %v2414_v1  ;;  %v2417_v38 = vpop.f32.mrb[62].mxu0  ;;  %2684 = vmatprep.mubr.msk.bf16.mxu1 %vm775_vm0, %v753_v56 }
 0x170   :  { %v2418_v54 = vpop.f32.mrb[63].mxu0 }
 0x171   :  { %v2419_v39 = vadd.f32 %v2418_v54, %v2417_v38  ;;  %v737_v51 = vmul.f32 %v2416_v25, %v3603_v33 }
 0x173   :  { %v738_v26 = vmul.f32 %v2419_v39, %v3605_v60 }
 0x175   :  { %v754_v37 = vpack.c.bf16 %v738_v26, %v737_v51 }
 0x177   :  { %2685 = vmatmul.mubr.msk.bf16.gmra.mrb[28].mxu1 %vm775_vm0, %v754_v37 }
 0x178   :  { %1486 = vmatprep.mubr.bf16.mxu1 %v3106_v12 }
 0x1da   :  { %v2658_v43 = vpop.f32.mrb[0].mxu1 }
 0x1db   :  { %v1215_v1 = vadd.f32 %v2658_v43, %v3614_v13  ;;  %v1079_v45 = vpop.f32.mrb[1].mxu1 }
 0x1dc   :  { %v1213_v56 = vadd.f32 %v3614_v13, %v1079_v45  ;;  %v2659_v24 = vpop.f32.mrb[2].mxu1 }
 0x1dd   :  { %v1216_v25 = vadd.f32 %v2659_v24, %v3614_v13  ;;  %v1082_v38 = vpop.f32.mrb[3].mxu1  ;;  %v1247_v54 = vmax.f32 %v1215_v1, 0.0 }
 0x1de   :  { %v1214_v26 = vadd.f32 %v3614_v13, %v1082_v38  ;;  %v1245_v12 = vmax.f32 %v1213_v56, 0.0 }
 0x1df   :  { %v1248_v39 = vmax.f32 %v1216_v25, 0.0 }
 0x1e0   :  { %v1246_v51 = vmax.f32 %v1214_v26, 0.0 }
 0x1e1   :  { %v3620_v37 = vpack.c.bf16 %v1248_v39, %v1247_v54 }
 0x1e2   :  { %v3622_v60 = vpack.c.bf16 %v1246_v51, %v1245_v12 }
 0x1e4   :  { %2704 = vmatprep.mubr.bf16.mxu0 %v3622_v60 }
 0x1e5   :  { %2705 = vmatmul.mubr.bf16.vlgmr.msra.gmra.mrb[64].mxu0 %v3620_v37 }
 0x1ea   :  { %v2662_v43 = vpop.f32.mrb[4].mxu1 }
 0x1eb   :  { %v1219_v45 = vadd.f32 %v2662_v43, %v3614_v13  ;;  %v1095_v33 = vpop.f32.mrb[5].mxu1 }
 0x1ec   :  { %v1217_v24 = vadd.f32 %v3614_v13, %v1095_v33  ;;  %v2663_v36 = vpop.f32.mrb[6].mxu1 }
 0x1ed   :  { %v1220_v1 = vadd.f32 %v2663_v36, %v3614_v13  ;;  %v1098_v25 = vpop.f32.mrb[7].mxu1  ;;  %v1251_v38 = vmax.f32 %v1219_v45, 0.0 }
 0x1ee   :  { %v1218_v56 = vadd.f32 %v3614_v13, %v1098_v25  ;;  %v1249_v54 = vmax.f32 %v1217_v24, 0.0 }
 0x1ef   :  { %v1252_v26 = vmax.f32 %v1220_v1, 0.0 }
 0x1f0   :  { %v1250_v39 = vmax.f32 %v1218_v56, 0.0 }
 0x1f1   :  { %v3630_v12 = vpack.c.bf16 %v1252_v26, %v1251_v38 }
 0x1f2   :  { %v3632_v51 = vpack.c.bf16 %v1250_v39, %v1249_v54 }
 0x1f4   :  { %2708 = vmatprep.mubr.bf16.mxu0 %v3632_v51 }
 0x1f5   :  { %2709 = vmatmul.mubr.bf16.gmra.mrb[68].mxu0 %v3630_v12 }
 0x1fa   :  { %v2666_v43 = vpop.f32.mrb[8].mxu1 }
 0x1fb   :  { %v1223_v33 = vadd.f32 %v2666_v43, %v3614_v13  ;;  %v1111_v52 = vpop.f32.mrb[9].mxu1 }
 0x1fc   :  { %v1221_v36 = vadd.f32 %v3614_v13, %v1111_v52  ;;  %v2667_v4 = vpop.f32.mrb[10].mxu1 }
 0x1fd   :  { %v1224_v45 = vadd.f32 %v2667_v4, %v3614_v13  ;;  %v1114_v1 = vpop.f32.mrb[11].mxu1  ;;  %v1255_v25 = vmax.f32 %v1223_v33, 0.0 }
 0x1fe   :  { %v1222_v24 = vadd.f32 %v3614_v13, %v1114_v1  ;;  %v1253_v38 = vmax.f32 %v1221_v36, 0.0 }
 0x1ff   :  { %v1256_v56 = vmax.f32 %v1224_v45, 0.0 }
 0x200   :  { %v1254_v26 = vmax.f32 %v1222_v24, 0.0 }
 0x201   :  { %v3640_v54 = vpack.c.bf16 %v1256_v56, %v1255_v25 }
 0x202   :  { %v3642_v39 = vpack.c.bf16 %v1254_v26, %v1253_v38 }
 0x204   :  { %2712 = vmatprep.mubr.bf16.mxu0 %v3642_v39 }
 0x205   :  { %2713 = vmatmul.mubr.bf16.gmra.mrb[72].mxu0 %v3640_v54 }
 0x20a   :  { %v2670_v43 = vpop.f32.mrb[12].mxu1 }
 0x20b   :  { %v1227_v52 = vadd.f32 %v2670_v43, %v3614_v13  ;;  %v1127_v42 = vpop.f32.mrb[13].mxu1 }
 0x20c   :  { %v1225_v4 = vadd.f32 %v3614_v13, %v1127_v42  ;;  %v2671_v40 = vpop.f32.mrb[14].mxu1 }
 0x20d   :  { %v1228_v33 = vadd.f32 %v2671_v40, %v3614_v13  ;;  %v1130_v45 = vpop.f32.mrb[15].mxu1  ;;  %v1259_v1 = vmax.f32 %v1227_v52, 0.0 }
 0x20e   :  { %v1226_v36 = vadd.f32 %v3614_v13, %v1130_v45  ;;  %v1257_v25 = vmax.f32 %v1225_v4, 0.0 }
 0x20f   :  { %v1260_v24 = vmax.f32 %v1228_v33, 0.0 }
 0x210   :  { %v1258_v56 = vmax.f32 %v1226_v36, 0.0 }
 0x211   :  { %v3650_v38 = vpack.c.bf16 %v1260_v24, %v1259_v1 }
 0x212   :  { %v3652_v26 = vpack.c.bf16 %v1258_v56, %v1257_v25 }
 0x214   :  { %2716 = vmatprep.mubr.bf16.mxu0 %v3652_v26 }
 0x215   :  { %2717 = vmatmul.mubr.bf16.gmra.mrb[76].mxu0 %v3650_v38 }
 0x21a   :  { %v2674_v43 = vpop.f32.mrb[16].mxu1 }
 0x21b   :  { %v1231_v42 = vadd.f32 %v2674_v43, %v3614_v13  ;;  %v1143_v23 = vpop.f32.mrb[17].mxu1 }
 0x21c   :  { %v1229_v40 = vadd.f32 %v3614_v13, %v1143_v23  ;;  %v2675_v16 = vpop.f32.mrb[18].mxu1 }
 0x21d   :  { %v1232_v52 = vadd.f32 %v2675_v16, %v3614_v13  ;;  %v1146_v33 = vpop.f32.mrb[19].mxu1  ;;  %v1263_v45 = vmax.f32 %v1231_v42, 0.0 }
 0x21e   :  { %v1230_v4 = vadd.f32 %v3614_v13, %v1146_v33  ;;  %v1261_v1 = vmax.f32 %v1229_v40, 0.0 }
 0x21f   :  { %v1264_v36 = vmax.f32 %v1232_v52, 0.0 }
 0x220   :  { %v1262_v24 = vmax.f32 %v1230_v4, 0.0 }
 0x221   :  { %v1447_v25 = vpack.c.bf16 %v1264_v36, %v1263_v45 }
 0x222   :  { %v1446_v56 = vpack.c.bf16 %v1262_v24, %v1261_v1 }
 0x224   :  { %2456 = vmatprep.subr.bf16.mxu1 %v1446_v56  ;;  %2720 = vmatprep.mubr.bf16.mxu0 %v1446_v56 }
 0x225   :  { %2457 = vmatpush3.bf16.msra.mxu1 %v3622_v60  ;;  %2721 = vmatmul.mubr.bf16.gmra.mrb[80].mxu0 %v1447_v25 }
 0x226   :  { %2458 = vmatprep.subr.bf16.mxu1 %v1447_v25 }
 0x229   :  { %2459 = vmatpush3.bf16.msra.mxu1 %v3620_v37 }
 0x22a   :  { %v2678_v23 = vpop.f32.mrb[20].mxu1 }
 0x22b   :  { %v1235_v16 = vadd.f32 %v2678_v23, %v3614_v13  ;;  %v1159_v43 = vpop.f32.mrb[21].mxu1 }
 0x22c   :  { %v1233_v33 = vadd.f32 %v3614_v13, %v1159_v43  ;;  %v2679_v42 = vpop.f32.mrb[22].mxu1 }
 0x22d   :  { %v1236_v40 = vadd.f32 %v2679_v42, %v3614_v13  ;;  %v1162_v52 = vpop.f32.mrb[23].mxu1  ;;  %v1267_v45 = vmax.f32 %v1235_v16, 0.0 }
 0x22e   :  { %v1234_v4 = vadd.f32 %v3614_v13, %v1162_v52  ;;  %v1265_v1 = vmax.f32 %v1233_v33, 0.0 }
 0x22f   :  { %v1268_v36 = vmax.f32 %v1236_v40, 0.0 }
 0x230   :  { %v1266_v60 = vmax.f32 %v1234_v4, 0.0 }
 0x231   :  { %v1449_v24 = vpack.c.bf16 %v1268_v36, %v1267_v45 }
 0x232   :  { %v1448_v25 = vpack.c.bf16 %v1266_v60, %v1265_v1 }
 0x234   :  { %2460 = vmatprep.subr.bf16.mxu1 %v1448_v25  ;;  %2724 = vmatprep.mubr.bf16.mxu0 %v1448_v25 }
 0x235   :  { %2461 = vmatpush3.bf16.msra.mxu1 %v3632_v51  ;;  %2725 = vmatmul.mubr.bf16.gmra.mrb[84].mxu0 %v1449_v24 }
 0x236   :  { %2462 = vmatprep.subr.bf16.mxu1 %v1449_v24 }
 0x239   :  { %2463 = vmatpush3.bf16.msra.mxu1 %v3630_v12  ;;  %v1277_v12 = vlaneseq }
 0x23a   :  { %v2682_v37 = vpop.f32.mrb[24].mxu1 }
 0x23b   :  { %v1239_v56 = vadd.f32 %v2682_v37, %v3614_v13  ;;  %v1175_v23 = vpop.f32.mrb[25].mxu1  ;;  %v1278_v60 = vshrl.u32 %v1277_v12, 7  ;;  %v2957_v12 = vld [vmem:[%s3876_s0 + $0x10] ss:$8 sps:$4 sm:$0xff]  }
 0x23c   :  { %v1237_v43 = vadd.f32 %v3614_v13, %v1175_v23  ;;  %v2683_v16 = vpop.f32.mrb[26].mxu1 }
 0x23d   :  { %v1240_v33 = vadd.f32 %v2683_v16, %v3614_v13  ;;  %v1178_v42 = vpop.f32.mrb[27].mxu1  ;;  %v1271_v52 = vmax.f32 %v1239_v56, 0.0 }
 0x23e   :  { %v1238_v40 = vadd.f32 %v3614_v13, %v1178_v42  ;;  %v1269_v45 = vmax.f32 %v1237_v43, 0.0  ;;  %v1309_v43 = vadd.s32 248, %v1278_v60  ;;  %v2958_v60 = vld [vmem:[%s3876_s0 + $0x24] ss:$8 sps:$4 sm:$0xff]  }
 0x23f   :  { %v1272_v4 = vmax.f32 %v1240_v33, 0.0 }
 0x240   :  { %v1270_v51 = vmax.f32 %v1238_v40, 0.0  ;;  %vm1341_vm1 = vcmp.lt.s32.totalorder %v1309_v43, 250 }
 0x241   :  { %v1451_v36 = vpack.c.bf16 %v1272_v4, %v1271_v52  ;;  %vm3682_vm3 = vmpackc.low %vm1341_vm1, %vm2988_vm2 }
 0x242   :  { %v1450_v1 = vpack.c.bf16 %v1270_v51, %v1269_v45 }
 0x244   :  { %2464 = vmatprep.subr.bf16.mxu1 %v1450_v1  ;;  %2728 = vmatprep.mubr.bf16.mxu0 %v1450_v1  ;;  %v2956_v1 = vld [vmem:[%s3876_s0 + $0x14] ss:$8 sps:$4 sm:$0xff]  }
 0x245   :  { %2465 = vmatpush3.bf16.msra.mxu1 %v3642_v39  ;;  %2729 = vmatmul.mubr.bf16.gmra.mrb[88].mxu0 %v1451_v36 }
 0x246   :  { %2466 = vmatprep.subr.bf16.mxu1 %v1451_v36  ;;  %v2947_v36 = vld [vmem:[%s3882_s6] sm:$0xff]  }
 0x247   :  { %2736 = vmatprep.subr.bf16.mxu0 %v2947_v36 }
 0x248   :  { %2737 = vmatpush3.bf16.msra.mxu0 %v2947_v36 }
 0x249   :  { %2467 = vmatpush3.bf16.msra.mxu1 %v3640_v54 }
 0x24a   :  { %v2686_v24 = vpop.f32.mrb[28].mxu1 }
 0x24b   :  { %v1243_v25 = vadd.f32 %v2686_v24, %v3614_v13  ;;  %v1191_v37 = vpop.f32.mrb[29].mxu1  ;;  %v2960_v24 = vld [vmem:[%s3876_s0 + $0x34] ss:$8 sps:$4 sm:$0xff]  }
 0x24c   :  { %v1241_v56 = vadd.f32 %v3614_v13, %v1191_v37  ;;  %v2687_v23 = vpop.f32.mrb[30].mxu1 }
 0x24d   :  { %v1244_v16 = vadd.f32 %v2687_v23, %v3614_v13  ;;  %v1194_v33 = vpop.f32.mrb[31].mxu1  ;;  %v1275_v40 = vmax.f32 %v1243_v25, 0.0 }
 0x24e   :  { %v1242_v42 = vadd.f32 %v3614_v13, %v1194_v33  ;;  %v1273_v52 = vmax.f32 %v1241_v56, 0.0  ;;  %v2955_v13 = vld [vmem:[%s3876_s0] ss:$8 sps:$4 sm:$0xff]  }
 0x24f   :  { %v1276_v39 = vmax.f32 %v1244_v16, 0.0 }
 0x250   :  { %v1274_v4 = vmax.f32 %v1242_v42, 0.0 }
 0x251   :  { %v3678_v45 = vpack.c.bf16 %v1276_v39, %v1275_v40 }
 0x252   :  { %v3680_v54 = vpack.c.bf16 %v1274_v4, %v1273_v52 }
 0x254   :  { %2468 = vmatprep.subr.bf16.mxu1 %v3680_v54 }
 0x255   :  { %2469 = vmatpush3.bf16.msra.mxu1 %v3652_v26  ;;  %v2948_v26 = vld [vmem:[%s3882_s6 + $0x8] sm:$0xff]  }
 0x256   :  { %2470 = vmatprep.subr.msk.bf16.mxu1 %vm3682_vm3, %v3678_v45  ;;  %2738 = vmatprep.subr.bf16.mxu0 %v2948_v26 }
 0x257   :  { %2739 = vmatpush3.bf16.msra.mxu0 %v2948_v26 }
 0x259   :  { %2471 = vmatpush3.bf16.msra.mxu1 %v3650_v38  ;;  %v2949_v38 = vld [vmem:[%s3882_s6 + $0x10] sm:$0xff]  }
 0x25a   :  { %2784 = vmatprep.subr.bf16.mxu1 %v3447_v27  ;;  %2740 = vmatprep.subr.bf16.mxu0 %v2949_v38 }
 0x25b   :  { %2741 = vmatpush3.bf16.msra.mxu0 %v2949_v38 }
 0x25c   :  { %1487 = vmatmul.mubr.bf16.vlgmr.msra.gmra.mrb[32].mxu1 %v2955_v13 }
 0x25d   :  { %1494 = vmatprep.mubr.bf16.mxu1 %v2956_v1  ;;  %2792 = vmatpush3.bf16.msra.mxu1 %v3447_v27  ;;  %v2950_v27 = vld [vmem:[%s3882_s6 + $0x18] sm:$0xff]  }
 0x25e   :  { %2785 = vmatprep.subr.bf16.mxu1 %v3452_v28  ;;  %2742 = vmatprep.subr.bf16.mxu0 %v2950_v27 }
 0x25f   :  { %2743 = vmatpush3.bf16.msra.mxu0 %v2950_v27 }
 0x261   :  { %2793 = vmatpush3.bf16.msra.mxu1 %v3452_v28  ;;  %v2959_v28 = vld [vmem:[%s3876_s0 + $0x20] ss:$8 sps:$4 sm:$0xff]  }
 0x262   :  { %2786 = vmatprep.subr.bf16.mxu1 %v3464_v34 }
 0x264   :  { %1495 = vmatmul.mubr.bf16.gmra.mrb[36].mxu1 %v2957_v12  ;;  %v3932_v12 = vld [vmem:[#allocation5_spill] sm:$0xff] }
 0x265   :  { %1502 = vmatprep.mubr.bf16.mxu1 %v2958_v60  ;;  %2794 = vmatpush3.bf16.msra.mxu1 %v3464_v34  ;;  %v2961_v34 = vld [vmem:[%s3876_s0 + $0x30] ss:$8 sps:$4 sm:$0xff]   ;;  %v3933_v60 = vld [vmem:[#allocation6_spill] sm:$0xff] }
 0x266   :  { %2787 = vmatprep.subr.bf16.mxu1 %v3474_v41 }
 0x269   :  { %2795 = vmatpush3.bf16.msra.mxu1 %v3474_v41  ;;  %v2962_v41 = vld [vmem:[%s3876_s0 + $0x44] ss:$8 sps:$4 sm:$0xff]  }
 0x26a   :  { %2788 = vmatprep.subr.bf16.mxu1 %v3485_v48 }
 0x26c   :  { %1503 = vmatmul.mubr.bf16.gmra.mrb[40].mxu1 %v2959_v28 }
 0x26d   :  { %1510 = vmatprep.mubr.bf16.mxu1 %v2960_v24  ;;  %2796 = vmatpush3.bf16.msra.mxu1 %v3485_v48 }
 0x26e   :  { %2789 = vmatprep.subr.bf16.mxu1 %v3493_v57 }
 0x271   :  { %2797 = vmatpush3.bf16.msra.mxu1 %v3493_v57 }
 0x272   :  { %2790 = vmatprep.subr.bf16.mxu1 %v3577_v30 }
 0x274   :  { %1511 = vmatmul.mubr.bf16.gmra.mrb[44].mxu1 %v2961_v34 }
 0x275   :  { %1518 = vmatprep.mubr.bf16.mxu1 %v2962_v41  ;;  %2798 = vmatpush3.bf16.msra.mxu1 %v3577_v30 }
 0x276   :  { %2791 = vmatprep.subr.bf16.mxu1 %v3585_v58 }
 0x279   :  { %2799 = vmatpush3.bf16.msra.mxu1 %v3585_v58 }
 0x27c   :  { %1519 = vmatmul.mubr.bf16.gmra.mrb[48].mxu1 %v3236_v47  ;;  %v2951_v47 = vld [vmem:[%s3882_s6 + $0x20] sm:$0xff]  }
 0x27d   :  { %1526 = vmatprep.mubr.bf16.mxu1 %v3244_v49  ;;  %2744 = vmatprep.subr.bf16.mxu0 %v2951_v47  ;;  %v2952_v49 = vld [vmem:[%s3882_s6 + $0x28] sm:$0xff]  }
 0x27e   :  { %2745 = vmatpush3.bf16.msra.mxu0 %v2951_v47 }
 0x27f   :  { %2746 = vmatprep.subr.bf16.mxu0 %v2952_v49 }
 0x282   :  { %2747 = vmatpush3.bf16.msra.mxu0 %v2952_v49 }
 0x284   :  { %1527 = vmatmul.mubr.bf16.gmra.mrb[52].mxu1 %v3264_v53  ;;  %v2953_v53 = vld [vmem:[%s3882_s6 + $0x30] sm:$0xff]  }
 0x285   :  { %1534 = vmatprep.mubr.bf16.mxu1 %v3272_v55  ;;  %2748 = vmatprep.subr.bf16.mxu0 %v2953_v53  ;;  %v2954_v55 = vld [vmem:[%s3882_s6 + $0x38] sm:$0xff]  }
 0x286   :  { %2749 = vmatpush3.bf16.msra.mxu0 %v2953_v53  ;;  %v3934_v53 = vld [vmem:[#allocation7_spill] sm:$0xff] }
 0x287   :  { %2750 = vmatprep.subr.bf16.mxu0 %v2954_v55 }
 0x28a   :  { %2751 = vmatpush3.bf16.msra.mxu0 %v2954_v55 }
 0x28c   :  { %1535 = vmatmul.mubr.bf16.gmra.mrb[56].mxu1 %v3292_v59 }
 0x28d   :  { %1542 = vmatprep.mubr.bf16.mxu1 %v3300_v61 }
 0x294   :  { %1543 = vmatmul.mubr.bf16.gmra.mrb[60].mxu1 %v3320_v2 }
 0x295   :  { %1550 = vmatprep.mubr.bf16.mxu1 %v3328_v6 }
 0x29c   :  { %1551 = vmatmul.mubr.bf16.gmra.mrb[64].mxu1 %v3339_v0 }
 0x29d   :  { %1558 = vmatprep.mubr.bf16.mxu1 %v3344_v8 }
 0x2a4   :  { %1559 = vmatmul.mubr.bf16.gmra.mrb[68].mxu1 %v3355_v3 }
 0x2a5   :  { %1566 = vmatprep.mubr.bf16.mxu1 %v3360_v5 }
 0x2ac   :  { %1567 = vmatmul.mubr.bf16.gmra.mrb[72].mxu1 %v3371_v7 }
 0x2ad   :  { %1574 = vmatprep.mubr.bf16.mxu1 %v3376_v9 }
 0x2b4   :  { %1575 = vmatmul.mubr.bf16.gmra.mrb[76].mxu1 %v3385_v10 }
 0x2b5   :  { %1582 = vmatprep.mubr.bf16.mxu1 %v3390_v11 }
 0x2bc   :  { %1583 = vmatmul.mubr.bf16.gmra.mrb[80].mxu1 %v3400_v14 }
 0x2bd   :  { %1590 = vmatprep.mubr.bf16.mxu1 %v3405_v15 }
 0x2c4   :  { %1591 = vmatmul.mubr.bf16.gmra.mrb[84].mxu1 %v3415_v17 }
 0x2c5   :  { %1598 = vmatprep.mubr.bf16.mxu1 %v3420_v18 }
 0x2cc   :  { %1599 = vmatmul.mubr.bf16.gmra.mrb[88].mxu1 %v3427_v19 }
 0x2cd   :  { %1606 = vmatprep.mubr.bf16.mxu1 %v3432_v20 }
 0x2d4   :  { %1607 = vmatmul.mubr.bf16.gmra.mrb[92].mxu1 %v3439_v21 }
 0x2d5   :  { %2732 = vmatprep.mubr.bf16.mxu1 %v3680_v54 }
 0x2dc   :  { %2733 = vmatmul.mubr.msk.bf16.vlgmr.msra.gmra.mrb[96].mxu1 %vm3682_vm3, %v3678_v45 }
 0x32f   :  { %v2472_v59 = vpop.f32.mrb[32].mxu1 }
 0x330   :  { %v2473_v61 = vpop.f32.mrb[33].mxu1 }
 0x331   :  { %v2474_v2 = vadd.f32 %v2473_v61, %v2472_v59  ;;  %v2475_v6 = vpop.f32.mrb[34].mxu1  ;;  %v3935_v59 = vld [vmem:[#allocation8_spill] sm:$0xff] }
 0x332   :  { %v2476_v0 = vpop.f32.mrb[35].mxu1 }
 0x333   :  { %v2477_v8 = vadd.f32 %v2476_v0, %v2475_v6  ;;  %v1615_v3 = vmul.f32 %v2474_v2, %v3442_v22 }
 0x335   :  { %v1616_v5 = vmul.f32 %v2477_v8, %v3454_v29 }
 0x337   :  { %v2478_v7 = vpop.f32.mrb[36].mxu1  ;;  %v1647_v9 = vpack.c.bf16 %v1616_v5, %v1615_v3 }
 0x338   :  { %v2479_v10 = vpop.f32.mrb[37].mxu1 }
 0x339   :  { %v2480_v11 = vadd.f32 %v2479_v10, %v2478_v7  ;;  %v2481_v14 = vpop.f32.mrb[38].mxu1  ;;  %2752 = vmatprep.mubr.bf16.mxu0 %v1647_v9  ;;  %v3936_v9 = vld [vmem:[#allocation9_spill] sm:$0xff] }
 0x33a   :  { %v2482_v15 = vpop.f32.mrb[39].mxu1 }
 0x33b   :  { %v2483_v17 = vadd.f32 %v2482_v15, %v2481_v14  ;;  %v1617_v18 = vmul.f32 %v2480_v11, %v3466_v35  ;;  %v3937_v11 = vld [vmem:[#allocation10_spill] sm:$0xff] }
 0x33d   :  { %v1618_v19 = vmul.f32 %v2483_v17, %v3476_v44 }
 0x33f   :  { %v1648_v20 = vpack.c.bf16 %v1618_v19, %v1617_v18  ;;  %v2484_v21 = vpop.f32.mrb[40].mxu1 }
 0x340   :  { %v2485_v48 = vpop.f32.mrb[41].mxu1 }
 0x341   :  { %v2486_v57 = vadd.f32 %v2485_v48, %v2484_v21  ;;  %v2487_v30 = vpop.f32.mrb[42].mxu1  ;;  %2753 = vmatmul.mubr.bf16.vlgmr.msra.gmra.mrb[64].mxu0 %v1648_v20 }
 0x342   :  { %v2488_v22 = vpop.f32.mrb[43].mxu1 }
 0x343   :  { %v2489_v29 = vadd.f32 %v2488_v22, %v2487_v30  ;;  %v1619_v58 = vmul.f32 %v2486_v57, %v3495_v62  ;;  %v3938_v57 = vld [vmem:[#allocation11_spill] sm:$0xff]  ;;  %v3939_v22 = vld [vmem:[#allocation12_spill] sm:$0xff] }
 0x345   :  { %v1620_v25 = vmul.f32 %v2489_v29, %v3497_v63 }
 0x347   :  { %v2490_v37 = vpop.f32.mrb[44].mxu1  ;;  %v1649_v56 = vpack.c.bf16 %v1620_v25, %v1619_v58 }
 0x348   :  { %v2491_v23 = vpop.f32.mrb[45].mxu1 }
 0x349   :  { %v2492_v43 = vadd.f32 %v2491_v23, %v2490_v37  ;;  %v2493_v16 = vpop.f32.mrb[46].mxu1  ;;  %2756 = vmatprep.mubr.bf16.mxu0 %v1649_v56 }
 0x34a   :  { %v2494_v35 = vpop.f32.mrb[47].mxu1 }
 0x34b   :  { %v2495_v44 = vadd.f32 %v2494_v35, %v2493_v16  ;;  %v1621_v33 = vmul.f32 %v2492_v43, %v3505_v31  ;;  %v3940_v35 = vld [vmem:[#allocation13_spill] sm:$0xff] }
 0x34d   :  { %v1622_v42 = vmul.f32 %v2495_v44, %v3507_v32 }
 0x34f   :  { %v2496_v40 = vpop.f32.mrb[48].mxu1  ;;  %v1650_v39 = vpack.c.bf16 %v1622_v42, %v1621_v33  ;;  %v3941_v33 = vld [vmem:[#allocation14_spill] sm:$0xff] }
 0x350   :  { %v2497_v52 = vpop.f32.mrb[49].mxu1 }
 0x351   :  { %v2498_v4 = vadd.f32 %v2497_v52, %v2496_v40  ;;  %v2499_v45 = vpop.f32.mrb[50].mxu1  ;;  %2757 = vmatmul.mubr.bf16.gmra.mrb[68].mxu0 %v1650_v39 }
 0x352   :  { %v2500_v62 = vpop.f32.mrb[51].mxu1 }
 0x353   :  { %v2501_v63 = vadd.f32 %v2500_v62, %v2499_v45  ;;  %v1623_v54 = vmul.f32 %v2498_v4, %v3512_v46 }
 0x355   :  { %v1624_v51 = vmul.f32 %v2501_v63, %v3514_v50 }
 0x357   :  { %v2502_v13 = vpop.f32.mrb[52].mxu1  ;;  %v1651_v36 = vpack.c.bf16 %v1624_v51, %v1623_v54  ;;  %v3942_v54 = vld [vmem:[#allocation15_spill] sm:$0xff] }
 0x358   :  { %v2503_v26 = vpop.f32.mrb[53].mxu1 }
 0x359   :  { %v2504_v1 = vadd.f32 %v2503_v26, %v2502_v13  ;;  %v2505_v38 = vpop.f32.mrb[54].mxu1  ;;  %2760 = vmatprep.mubr.bf16.mxu0 %v1651_v36  ;;  %v3943_v13 = vld [vmem:[#allocation16_spill] sm:$0xff] }
 0x35a   :  { %v2506_v31 = vpop.f32.mrb[55].mxu1 }
 0x35b   :  { %v2507_v32 = vadd.f32 %v2506_v31, %v2505_v38  ;;  %v1625_v27 = vmul.f32 %v2504_v1, %v3932_v12 }
 0x35d   :  { %v1626_v28 = vmul.f32 %v2507_v32, %v3933_v60  ;;  %v3944_v60 = vld [vmem:[#allocation17_spill] sm:$0xff] }
 0x35f   :  { %v2508_v24 = vpop.f32.mrb[56].mxu1  ;;  %v1652_v34 = vpack.c.bf16 %v1626_v28, %v1625_v27 }
 0x360   :  { %v2509_v41 = vpop.f32.mrb[57].mxu1 }
 0x361   :  { %v2510_v47 = vadd.f32 %v2509_v41, %v2508_v24  ;;  %v2511_v49 = vpop.f32.mrb[58].mxu1  ;;  %2761 = vmatmul.mubr.bf16.gmra.mrb[72].mxu0 %v1652_v34  ;;  %v3945_v24 = vld [vmem:[#allocation18_spill] sm:$0xff] }
 0x362   :  { %v2512_v46 = vpop.f32.mrb[59].mxu1 }
 0x363   :  { %v2513_v50 = vadd.f32 %v2512_v46, %v2511_v49  ;;  %v1627_v55 = vmul.f32 %v2510_v47, %v3934_v53 }
 0x365   :  { %v1628_v61 = vmul.f32 %v2513_v50, %v3935_v59  ;;  %v3946_v59 = vld [vmem:[#allocation19_spill] sm:$0xff] }
 0x367   :  { %v2514_v2 = vpop.f32.mrb[60].mxu1  ;;  %v1653_v6 = vpack.c.bf16 %v1628_v61, %v1627_v55 }
 0x368   :  { %v2515_v0 = vpop.f32.mrb[61].mxu1 }
 0x369   :  { %v2516_v8 = vadd.f32 %v2515_v0, %v2514_v2  ;;  %v2517_v3 = vpop.f32.mrb[62].mxu1  ;;  %2764 = vmatprep.mubr.bf16.mxu0 %v1653_v6  ;;  %v3947_v2 = vld [vmem:[#allocation20_spill] sm:$0xff] }
 0x36a   :  { %v2518_v5 = vpop.f32.mrb[63].mxu1 }
 0x36b   :  { %v2519_v7 = vadd.f32 %v2518_v5, %v2517_v3  ;;  %v1629_v10 = vmul.f32 %v2516_v8, %v3936_v9 }
 0x36d   :  { %v1630_v14 = vmul.f32 %v2519_v7, %v3937_v11  ;;  %v3948_v11 = vld [vmem:[#allocation21_spill] sm:$0xff] }
 0x36f   :  { %v2520_v15 = vpop.f32.mrb[64].mxu1  ;;  %v1654_v17 = vpack.c.bf16 %v1630_v14, %v1629_v10 }
 0x370   :  { %v2521_v18 = vpop.f32.mrb[65].mxu1 }
 0x371   :  { %v2522_v19 = vadd.f32 %v2521_v18, %v2520_v15  ;;  %v2523_v20 = vpop.f32.mrb[66].mxu1  ;;  %2765 = vmatmul.mubr.bf16.gmra.mrb[76].mxu0 %v1654_v17  ;;  %v3949_v15 = vld [vmem:[#allocation22_spill] sm:$0xff] }
 0x372   :  { %v2524_v21 = vpop.f32.mrb[67].mxu1 }
 0x373   :  { %v2525_v48 = vadd.f32 %v2524_v21, %v2523_v20  ;;  %v1631_v30 = vmul.f32 %v2522_v19, %v3938_v57 }
 0x375   :  { %v1632_v29 = vmul.f32 %v2525_v48, %v3939_v22  ;;  %v3950_v22 = vld [vmem:[#allocation23_spill] sm:$0xff] }
 0x377   :  { %v2526_v58 = vpop.f32.mrb[68].mxu1  ;;  %v1655_v25 = vpack.c.bf16 %v1632_v29, %v1631_v30 }
 0x378   :  { %v2527_v37 = vpop.f32.mrb[69].mxu1 }
 0x379   :  { %v2528_v56 = vadd.f32 %v2527_v37, %v2526_v58  ;;  %v2529_v23 = vpop.f32.mrb[70].mxu1  ;;  %2768 = vmatprep.mubr.bf16.mxu0 %v1655_v25  ;;  %v3951_v58 = vld [vmem:[#allocation24_spill] sm:$0xff] }
 0x37a   :  { %v2530_v43 = vpop.f32.mrb[71].mxu1 }
 0x37b   :  { %v2531_v16 = vadd.f32 %v2530_v43, %v2529_v23  ;;  %v1633_v44 = vmul.f32 %v2528_v56, %v3940_v35 }
 0x37d   :  { %v1634_v42 = vmul.f32 %v2531_v16, %v3941_v33  ;;  %v3952_v33 = vld [vmem:[#allocation25_spill] sm:$0xff] }
 0x37f   :  { %v2532_v40 = vpop.f32.mrb[72].mxu1  ;;  %v1656_v39 = vpack.c.bf16 %v1634_v42, %v1633_v44 }
 0x380   :  { %v2533_v52 = vpop.f32.mrb[73].mxu1 }
 0x381   :  { %v2534_v4 = vadd.f32 %v2533_v52, %v2532_v40  ;;  %v2535_v45 = vpop.f32.mrb[74].mxu1  ;;  %2769 = vmatmul.mubr.bf16.gmra.mrb[80].mxu0 %v1656_v39  ;;  %v3953_v40 = vld [vmem:[#allocation26_spill] sm:$0xff] }
 0x382   :  { %v2536_v62 = vpop.f32.mrb[75].mxu1 }
 0x383   :  { %v2537_v63 = vadd.f32 %v2536_v62, %v2535_v45  ;;  %v1635_v51 = vmul.f32 %v2534_v4, %v3942_v54  ;;  %v3826_v54 = vld [vmem:[%s3884_s8] ss:$0 sm:$0xff]  ;;  %s2989_s8 = smov [#allocation2]  }
 0x384   :  { %s2189_s13 = sshll.u32 %s2989_s8, 4  ;;  %s2190_s13 = int_to_ptr.vmem [resolvable:$true] %s2189_s13 }
 0x385   :  { %v1636_v36 = vmul.f32 %v2537_v63, %v3943_v13  ;;  %s2963_s14 = scalar_lea.vmem %s2190_s13, 4096  ;;  %p2968_p1 = scmp.lt.s32.totalorder %s2190_s13, %s2190_s13 }
 0x386   :  { %p2964_p0 = scmp.ne.s32.totalorder %s2190_s13, %s2963_s14  ;;  %p2969_p2 = scmp.lt.s32.totalorder %s2963_s14, %s2963_s14 }
 0x387   :  { %v2538_v26 = vpop.f32.mrb[76].mxu1  ;;  %v1657_v1 = vpack.c.bf16 %v1636_v36, %v1635_v51 }
 0x388   :  { %v2539_v38 = vpop.f32.mrb[77].mxu1  ;;  %p2970_p3 = por %p2969_p2, %p2968_p1 }
 0x389   :  { %v2540_v31 = vadd.f32 %v2539_v38, %v2538_v26  ;;  %v2541_v32 = vpop.f32.mrb[78].mxu1  ;;  %2772 = vmatprep.mubr.bf16.mxu0 %v1657_v1 }
 0x38a   :  { %v2542_v12 = vpop.f32.mrb[79].mxu1  ;;  %p2971_p4 = pnand %p2970_p3, %p2964_p0 }
 0x38b   :  { %v2543_v27 = vadd.f32 %v2542_v12, %v2541_v32  ;;  %v1637_v28 = vmul.f32 %v2540_v31, %v3944_v60 }
 0x38d   :  { %v1638_v34 = vmul.f32 %v2543_v27, %v3945_v24 }
 0x38f   :  { %v2544_v41 = vpop.f32.mrb[80].mxu1  ;;  %v1658_v47 = vpack.c.bf16 %v1638_v34, %v1637_v28 }
 0x390   :  { %v2545_v49 = vpop.f32.mrb[81].mxu1 }
 0x391   :  { %v2546_v46 = vadd.f32 %v2545_v49, %v2544_v41  ;;  %v2547_v50 = vpop.f32.mrb[82].mxu1  ;;  %2773 = vmatmul.mubr.bf16.gmra.mrb[84].mxu0 %v1658_v47 }
 0x392   :  { %v2548_v53 = vpop.f32.mrb[83].mxu1 }
 0x393   :  { %v2549_v55 = vadd.f32 %v2548_v53, %v2547_v50  ;;  %v1639_v61 = vmul.f32 %v2546_v46, %v3946_v59 }
 0x395   :  { %v1640_v6 = vmul.f32 %v2549_v55, %v3947_v2 }
 0x397   :  { %v2550_v0 = vpop.f32.mrb[84].mxu1  ;;  %v1659_v8 = vpack.c.bf16 %v1640_v6, %v1639_v61 }
 0x398   :  { %v2551_v3 = vpop.f32.mrb[85].mxu1 }
 0x399   :  { %v2552_v5 = vadd.f32 %v2551_v3, %v2550_v0  ;;  %v2553_v7 = vpop.f32.mrb[86].mxu1  ;;  %2776 = vmatprep.mubr.bf16.mxu0 %v1659_v8 }
 0x39a   :  { %v2554_v9 = vpop.f32.mrb[87].mxu1 }
 0x39b   :  { %v2555_v10 = vadd.f32 %v2554_v9, %v2553_v7  ;;  %v1641_v14 = vmul.f32 %v2552_v5, %v3948_v11 }
 0x39d   :  { %v1642_v17 = vmul.f32 %v2555_v10, %v3949_v15 }
 0x39f   :  { %v2556_v18 = vpop.f32.mrb[88].mxu1  ;;  %v1660_v19 = vpack.c.bf16 %v1642_v17, %v1641_v14 }
 0x3a0   :  { %v2557_v20 = vpop.f32.mrb[89].mxu1 }
 0x3a1   :  { %v2558_v21 = vadd.f32 %v2557_v20, %v2556_v18  ;;  %v2559_v48 = vpop.f32.mrb[90].mxu1  ;;  %2777 = vmatmul.mubr.bf16.gmra.mrb[88].mxu0 %v1660_v19 }
 0x3a2   :  { %v2560_v57 = vpop.f32.mrb[91].mxu1 }
 0x3a3   :  { %v2561_v30 = vadd.f32 %v2560_v57, %v2559_v48  ;;  %v1643_v29 = vmul.f32 %v2558_v21, %v3950_v22 }
 0x3a5   :  { %v1644_v25 = vmul.f32 %v2561_v30, %v3951_v58 }
 0x3a7   :  { %v2562_v37 = vpop.f32.mrb[92].mxu1  ;;  %v1661_v56 = vpack.c.bf16 %v1644_v25, %v1643_v29 }
 0x3a8   :  { %v2563_v23 = vpop.f32.mrb[93].mxu1 }
 0x3a9   :  { %v2564_v43 = vadd.f32 %v2563_v23, %v2562_v37  ;;  %v2565_v16 = vpop.f32.mrb[94].mxu1  ;;  %2780 = vmatprep.mubr.bf16.mxu0 %v1661_v56 }
 0x3aa   :  { %v2566_v35 = vpop.f32.mrb[95].mxu1 }
 0x3ab   :  { %v2567_v44 = vadd.f32 %v2566_v35, %v2565_v16  ;;  %v1645_v42 = vmul.f32 %v2564_v43, %v3952_v33 }
 0x3ad   :  { %v1646_v39 = vmul.f32 %v2567_v44, %v3953_v40 }
 0x3af   :  { %v3815_v52 = vpop.f32.mrb[96].mxu1  ;;  %v1662_v4 = vpack.c.bf16 %v1646_v39, %v1645_v42 }
 0x3b0   :  { %v3817_v45 = vpop.f32.mrb[97].mxu1 }
 0x3b1   :  { %v3819_v62 = vpop.f32.mrb[98].mxu1  ;;  %2781 = vmatmul.mubr.bf16.gmra.mrb[92].mxu0 %v1662_v4 }
 0x3b2   :  { %v3821_v63 = vpop.f32.mrb[99].mxu1 }
 0x414   :  { %v2754_v51 = vpop.f32.mrb[64].mxu0 }
 0x415   :  { %v2122_v13 = vadd.f32 %v2754_v51, %v3826_v54  ;;  %v1986_v36 = vpop.f32.mrb[65].mxu0 }
 0x416   :  { %v2120_v26 = vadd.f32 %v3826_v54, %v1986_v36  ;;  %v2755_v1 = vpop.f32.mrb[66].mxu0 }
 0x417   :  { %2154 = vst [vmem:[#allocation2 + $0x10] sm:$0xff] %v2122_v13  ;;  %v2123_v38 = vadd.f32 %v2755_v1, %v3826_v54  ;;  %v1989_v31 = vpop.f32.mrb[67].mxu0 }
 0x418   :  { %2152 = vst [vmem:[#allocation2] sm:$0xff] %v2120_v26  ;;  %v2121_v32 = vadd.f32 %v3826_v54, %v1989_v31 }
 0x419   :  { %2155 = vst [vmem:[#allocation2 + $0x18] sm:$0xff] %v2123_v38 }
 0x41a   :  { %2153 = vst [vmem:[#allocation2 + $0x8] sm:$0xff] %v2121_v32 }
 0x424   :  { %v2758_v12 = vpop.f32.mrb[68].mxu0 }
 0x425   :  { %v2126_v27 = vadd.f32 %v2758_v12, %v3826_v54  ;;  %v2002_v60 = vpop.f32.mrb[69].mxu0 }
 0x426   :  { %v2124_v28 = vadd.f32 %v3826_v54, %v2002_v60  ;;  %v2759_v24 = vpop.f32.mrb[70].mxu0 }
 0x427   :  { %2158 = vst [vmem:[#allocation2 + $0x30] sm:$0xff] %v2126_v27  ;;  %v2127_v34 = vadd.f32 %v2759_v24, %v3826_v54  ;;  %v2005_v41 = vpop.f32.mrb[71].mxu0 }
 0x428   :  { %2156 = vst [vmem:[#allocation2 + $0x20] sm:$0xff] %v2124_v28  ;;  %v2125_v47 = vadd.f32 %v3826_v54, %v2005_v41 }
 0x429   :  { %2159 = vst [vmem:[#allocation2 + $0x38] sm:$0xff] %v2127_v34 }
 0x42a   :  { %2157 = vst [vmem:[#allocation2 + $0x28] sm:$0xff] %v2125_v47 }
 0x434   :  { %v2762_v49 = vpop.f32.mrb[72].mxu0 }
 0x435   :  { %v2130_v46 = vadd.f32 %v2762_v49, %v3826_v54  ;;  %v2018_v50 = vpop.f32.mrb[73].mxu0 }
 0x436   :  { %v2128_v53 = vadd.f32 %v3826_v54, %v2018_v50  ;;  %v2763_v55 = vpop.f32.mrb[74].mxu0 }
 0x437   :  { %2162 = vst [vmem:[#allocation2 + $0x50] sm:$0xff] %v2130_v46  ;;  %v2131_v59 = vadd.f32 %v2763_v55, %v3826_v54  ;;  %v2021_v61 = vpop.f32.mrb[75].mxu0 }
 0x438   :  { %2160 = vst [vmem:[#allocation2 + $0x40] sm:$0xff] %v2128_v53  ;;  %v2129_v2 = vadd.f32 %v3826_v54, %v2021_v61 }
 0x439   :  { %2163 = vst [vmem:[#allocation2 + $0x58] sm:$0xff] %v2131_v59 }
 0x43a   :  { %2161 = vst [vmem:[#allocation2 + $0x48] sm:$0xff] %v2129_v2 }
 0x444   :  { %v2766_v6 = vpop.f32.mrb[76].mxu0 }
 0x445   :  { %v2134_v0 = vadd.f32 %v2766_v6, %v3826_v54  ;;  %v2034_v8 = vpop.f32.mrb[77].mxu0 }
 0x446   :  { %v2132_v3 = vadd.f32 %v3826_v54, %v2034_v8  ;;  %v2767_v5 = vpop.f32.mrb[78].mxu0 }
 0x447   :  { %2166 = vst [vmem:[#allocation2 + $0x70] sm:$0xff] %v2134_v0  ;;  %v2135_v7 = vadd.f32 %v2767_v5, %v3826_v54  ;;  %v2037_v9 = vpop.f32.mrb[79].mxu0 }
 0x448   :  { %2164 = vst [vmem:[#allocation2 + $0x60] sm:$0xff] %v2132_v3  ;;  %v2133_v10 = vadd.f32 %v3826_v54, %v2037_v9 }
 0x449   :  { %2167 = vst [vmem:[#allocation2 + $0x78] sm:$0xff] %v2135_v7 }
 0x44a   :  { %2165 = vst [vmem:[#allocation2 + $0x68] sm:$0xff] %v2133_v10 }
 0x454   :  { %v2770_v11 = vpop.f32.mrb[80].mxu0 }
 0x455   :  { %v2138_v14 = vadd.f32 %v2770_v11, %v3826_v54  ;;  %v2050_v15 = vpop.f32.mrb[81].mxu0 }
 0x456   :  { %v2136_v17 = vadd.f32 %v3826_v54, %v2050_v15  ;;  %v2771_v18 = vpop.f32.mrb[82].mxu0 }
 0x457   :  { %2170 = vst [vmem:[#allocation2 + $0x90] sm:$0xff] %v2138_v14  ;;  %v2139_v19 = vadd.f32 %v2771_v18, %v3826_v54  ;;  %v2053_v20 = vpop.f32.mrb[83].mxu0 }
 0x458   :  { %2168 = vst [vmem:[#allocation2 + $0x80] sm:$0xff] %v2136_v17  ;;  %v2137_v21 = vadd.f32 %v3826_v54, %v2053_v20 }
 0x459   :  { %2171 = vst [vmem:[#allocation2 + $0x98] sm:$0xff] %v2139_v19 }
 0x45a   :  { %2169 = vst [vmem:[#allocation2 + $0x88] sm:$0xff] %v2137_v21 }
 0x464   :  { %v2774_v48 = vpop.f32.mrb[84].mxu0 }
 0x465   :  { %v2142_v57 = vadd.f32 %v2774_v48, %v3826_v54  ;;  %v2066_v30 = vpop.f32.mrb[85].mxu0 }
 0x466   :  { %v2140_v22 = vadd.f32 %v3826_v54, %v2066_v30  ;;  %v2775_v29 = vpop.f32.mrb[86].mxu0 }
 0x467   :  { %2174 = vst [vmem:[#allocation2 + $0xb0] sm:$0xff] %v2142_v57  ;;  %v2143_v58 = vadd.f32 %v2775_v29, %v3826_v54  ;;  %v2069_v25 = vpop.f32.mrb[87].mxu0 }
 0x468   :  { %2172 = vst [vmem:[#allocation2 + $0xa0] sm:$0xff] %v2140_v22  ;;  %v2141_v37 = vadd.f32 %v3826_v54, %v2069_v25 }
 0x469   :  { %2175 = vst [vmem:[#allocation2 + $0xb8] sm:$0xff] %v2143_v58 }
 0x46a   :  { %2173 = vst [vmem:[#allocation2 + $0xa8] sm:$0xff] %v2141_v37 }
 0x474   :  { %v2778_v56 = vpop.f32.mrb[88].mxu0 }
 0x475   :  { %v2146_v23 = vadd.f32 %v2778_v56, %v3826_v54  ;;  %v2082_v43 = vpop.f32.mrb[89].mxu0 }
 0x476   :  { %v2144_v16 = vadd.f32 %v3826_v54, %v2082_v43  ;;  %v2779_v35 = vpop.f32.mrb[90].mxu0 }
 0x477   :  { %2178 = vst [vmem:[#allocation2 + $0xd0] sm:$0xff] %v2146_v23  ;;  %v2147_v44 = vadd.f32 %v2779_v35, %v3826_v54  ;;  %v2085_v33 = vpop.f32.mrb[91].mxu0 }
 0x478   :  { %2176 = vst [vmem:[#allocation2 + $0xc0] sm:$0xff] %v2144_v16  ;;  %v2145_v42 = vadd.f32 %v3826_v54, %v2085_v33 }
 0x479   :  { %2179 = vst [vmem:[#allocation2 + $0xd8] sm:$0xff] %v2147_v44 }
 0x47a   :  { %2177 = vst [vmem:[#allocation2 + $0xc8] sm:$0xff] %v2145_v42 }
 0x484   :  { %v2782_v40 = vpop.f32.mrb[92].mxu0 }
 0x485   :  { %v2107_v39 = vadd.f32 %v2782_v40, %v3815_v52  ;;  %v2098_v4 = vpop.f32.mrb[93].mxu0 }
 0x486   :  { %v2099_v51 = vadd.f32 %v2098_v4, %v3817_v45  ;;  %v2783_v13 = vpop.f32.mrb[94].mxu0 }
 0x487   :  { %v2150_v36 = vadd.f32 %v3826_v54, %v2107_v39  ;;  %v2110_v26 = vadd.f32 %v2783_v13, %v3819_v62  ;;  %v2101_v1 = vpop.f32.mrb[95].mxu0 }
 0x488   :  { %v2148_v38 = vadd.f32 %v3826_v54, %v2099_v51  ;;  %v2102_v31 = vadd.f32 %v2101_v1, %v3821_v63 }
 0x489   :  { %2182 = vst [vmem:[#allocation2 + $0xf0] sm:$0xff] %v2150_v36  ;;  %v2151_v32 = vadd.f32 %v3826_v54, %v2110_v26 }
 0x48a   :  { %2180 = vst [vmem:[#allocation2 + $0xe0] sm:$0xff] %v2148_v38  ;;  %v2149_v52 = vadd.f32 %v3826_v54, %v2102_v31 }
 0x48b   :  { %2183 = vst [vmem:[#allocation2 + $0xf8] sm:$0xff] %v2151_v32 }
 0x48c   :  { %2181 = vst [vmem:[#allocation2 + $0xe8] sm:$0xff] %v2149_v52 }
 0x48d   :  { %2974 = shalt.err (!%p2971_p4)
}
 0x48e   :  { %s2975_s17 = scalar_lea.hbm %s3885_s9, 4096 }
 0x48f   :  { %p2976_p5 = scmp.ne.s32.totalorder %s3885_s9, %s2975_s17  ;;  %p2979_p6 = scmp.lt.u32.totalorder %s2975_s17, %s3885_s9 }
 0x491   :  { %p2981_p7 = pnand %p2979_p6, %p2976_p5 }
 0x493   :  { %2984 = shalt.err (!%p2981_p7)
}
 0x494   :  { %s2990_s22 = smov 128   ;;  %s2991_s23 = smov 8  }
 0x495   :  { %2195 = dma.vmem_to_hbm [thread:$0]  %s2190_s13, 4096, %s3885_s9, [#allocation3], %s2990_s22, %s2990_s22, %s2991_s23  }
 0x496   :  { %2985 = dma.done.wait [#allocation3], 4096  }
 0x497   :  { %2986 = vsyncadd [#allocation3], 4294963200 }
 0x498   :  { %2199 = vsyncpa [#allocation3], 1 }

</bundles_post_ra>
